<compile_context>
chip_gen: v5e
topology: v5e:2x2
jax: 0.10.0
libtpu: 0.0.40
codegen_flags: <defaults>
</compile_context>

<pallas_src>
import jax
import jax.numpy as jnp
from jax.experimental import pallas as pl
from jax.experimental.pallas import tpu as pltpu


_INV_SQRT2 = 0.7071067811865476


def _gelu_exact(x):
    # PyTorch nn.GELU() default = exact erf formulation (kept for parity).
    return 0.5 * x * (1.0 + jax.lax.erf(x * _INV_SQRT2))


def _round_up(v, m):
    return ((v + m - 1) // m) * m


def _pick_tile(n, want, unit, min_keep):
    """Pick a tile size (multiple of `unit`) for an axis of extent `n`.

    Prefer the largest tile <= want that divides n exactly, so the O(N^2)
    adjacency can be streamed straight from HBM without a padded copy.
    Fall back to (clamped `want`, needs_pad=True) if only tiny divisors
    (< min_keep) exist.  Returns (tile, needs_pad)."""
    cap = min(want, _round_up(n, unit))
    cap = max(unit, (cap // unit) * unit)
    if n % cap == 0:
        return cap, False
    t = min(cap, (n // unit) * unit)
    lo = max(unit, min(min_keep, t))
    while t >= lo:
        if n % t == 0:
            return t, False
        t -= unit
    return cap, True


def gcnw_kernel(adj_ref, x_ref, w1_ref, b1_ref, w2_ref, b2_ref, o_ref, acc_ref):
    k = pl.program_id(1)

    # Init the aggregation accumulator at the first K block.
    @pl.when(k == 0)
    def _():
        acc_ref[...] = jnp.zeros_like(acc_ref)

    # Partial adj @ x: adj streamed in its HBM dtype (f32 fast path / bf16 fallback),
    # cast to bf16 on the VPU (hidden under the adj DMA), single-pass bf16 MXU matmul
    # with f32 accumulation.
    a = adj_ref[...].astype(jnp.bfloat16)
    acc_ref[...] += jnp.dot(a, x_ref[...], preferred_element_type=jnp.float32)

    # After the last K block: fused FeedForward on the f32 accumulator, one
    # lane-dense store per row tile.  Dropout layers are identity in eval mode.
    @pl.when(k == pl.num_programs(1) - 1)
    def _():
        ax = acc_ref[...]
        h = jnp.dot(ax, w1_ref[...], preferred_element_type=jnp.float32) + b1_ref[...]
        h = _gelu_exact(h)
        out = jnp.dot(h, w2_ref[...], preferred_element_type=jnp.float32) + b2_ref[...]
        o_ref[...] = out.astype(o_ref.dtype)


def gcnw_forward(adj, x, w1, b1, w2, b2, *, tm=512, tk=2048):
    """adj: [N, N], x: [N, dim], w1: [dim, hidden], b1: [hidden],
    w2: [hidden, dim], b2: [dim]  ->  [N, dim] (f32).

    w1/w2 are the transposed nn.Linear weights (so y = x @ W + b)."""
    N, dim = x.shape
    hidden = w1.shape[1]
    assert adj.shape == (N, N)
    assert w1.shape == (dim, hidden) and w2.shape == (hidden, dim)

    dim_pad = _round_up(dim, 128)        # lane-dense output width

    # Row tile (sublane-aligned) and K tile (lane-aligned).  Prefer divisors of N
    # so adj needs no padded HBM copy.
    tm, pad_m = _pick_tile(N, tm, 8, 128)
    tk, pad_k = _pick_tile(N, tk, 128, 512)
    nm_pad = _round_up(N, tm) if pad_m else N
    nk_pad = _round_up(N, tk) if pad_k else N

    if pad_m or pad_k:
        # Fallback: adj must be materialized once as a padded copy; cast it to bf16
        # while copying (rd 4B + wr 2B + kernel rd 2B = 8 B/elem, vs 12 B/elem for a
        # padded f32 copy).
        # TODO(synk): for non-divisible N this extra O(N^2) pass could be removed by
        # masking the boundary K block in-kernel instead of padding adj.
        adj_in = jnp.pad(adj.astype(jnp.bfloat16),
                         ((0, nm_pad - N), (0, nk_pad - N)))
    else:
        # Fast path: tiles divide N exactly; stream adj straight from HBM
        # (4 B/elem total adj traffic, no extra pad/cast pass).
        adj_in = adj

    # x is small (N x dim): cheap bf16 cast + zero row padding (padded K rows
    # contribute nothing to the reduction).
    x_in = jnp.pad(x.astype(jnp.bfloat16), ((0, nk_pad - N), (0, 0)))

    # Weights stay f32 (resident in VMEM); pad the output projection to the
    # lane-dense width.
    w1_f = w1.astype(jnp.float32)
    b1_2d = b1.reshape(1, hidden).astype(jnp.float32)
    w2_p = jnp.pad(w2.astype(jnp.float32), ((0, 0), (0, dim_pad - dim)))
    b2_p = jnp.pad(b2.astype(jnp.float32), ((0, dim_pad - dim),)).reshape(1, dim_pad)

    grid = (nm_pad // tm, nk_pad // tk)

    # Explicit scoped-VMEM budget from the tile footprint (double-buffered inputs
    # and outputs + accumulator), with headroom; capped to 32 MiB (safe on v5e/v6e/v7x).
    adj_item = jnp.dtype(adj_in.dtype).itemsize
    vmem_bytes = (
        2 * tm * tk * adj_item                                   # adj tiles
        + 2 * tk * dim * 2                                       # x tiles (bf16)
        + 2 * (dim * hidden + hidden + hidden * dim_pad + dim_pad) * 4  # weights/bias
        + 2 * tm * dim_pad * 4                                   # output tiles
        + tm * dim * 4                                           # accumulator scratch
    )
    vmem_limit = int(min(32 * 1024 * 1024, max(16 * 1024 * 1024, 2 * vmem_bytes)))

    out_padded = pl.pallas_call(
        gcnw_kernel,
        out_shape=jax.ShapeDtypeStruct((nm_pad, dim_pad), jnp.float32),
        grid_spec=pltpu.PrefetchScalarGridSpec(
            num_scalar_prefetch=0,
            grid=grid,
            in_specs=[
                pl.BlockSpec((tm, tk), lambda i, k: (i, k)),          # adj tile
                pl.BlockSpec((tk, dim), lambda i, k: (k, 0)),         # x tile
                pl.BlockSpec((dim, hidden), lambda i, k: (0, 0)),     # w1 (resident)
                pl.BlockSpec((1, hidden), lambda i, k: (0, 0)),       # b1
                pl.BlockSpec((hidden, dim_pad), lambda i, k: (0, 0)), # w2 (resident)
                pl.BlockSpec((1, dim_pad), lambda i, k: (0, 0)),      # b2
            ],
            out_specs=pl.BlockSpec((tm, dim_pad), lambda i, k: (i, 0)),
            scratch_shapes=[pltpu.VMEM((tm, dim), jnp.float32)],
        ),
        compiler_params=pltpu.CompilerParams(
            dimension_semantics=("parallel", "arbitrary"),
            vmem_limit_bytes=vmem_limit,
        ),
    )(adj_in, x_in, w1_f, b1_2d, w2_p, b2_p)

    if nm_pad == N and dim_pad == dim:
        return out_padded
    return out_padded[:N, :dim]


def reference_forward(adj, x, w1, b1, w2, b2):
    ax = adj @ x
    h = ax @ w1 + b1
    h = _gelu_exact(h)
    return h @ w2 + b2


if __name__ == "__main__":
    # Module hyperparameters (dropout only matters in training; eval => identity).
    dim = 32
    hidden_dim_multiplier = 2
    hidden = int(dim * hidden_dim_multiplier)  # 64

    key = jax.random.PRNGKey(0)
    k_adj, k_x, k_w1, k_b1, k_w2, k_b2, k_adj2, k_x2 = jax.random.split(key, 8)

    # nn.Linear(in, out): weight [out, in]; we pass W^T = [in, out].
    w1 = jax.random.normal(k_w1, (dim, hidden), jnp.float32) * (1.0 / jnp.sqrt(dim))
    b1 = jax.random.normal(k_b1, (hidden,), jnp.float32) * 0.01
    w2 = jax.random.normal(k_w2, (hidden, dim), jnp.float32) * (1.0 / jnp.sqrt(hidden))
    b2 = jax.random.normal(k_b2, (dim,), jnp.float32) * 0.01

    def make_graph(ka, kx, n):
        a = jax.random.uniform(ka, (n, n), jnp.float32)
        a = a / jnp.sum(a, axis=1, keepdims=True)   # row-normalized adjacency
        xx = jax.random.normal(kx, (n, dim), jnp.float32)
        return a, xx

    # Case 1: tiles divide N -> zero-copy adj streaming fast path, 2x2 tile grid.
    N1 = 256
    adj1, x1 = make_graph(k_adj, k_x, N1)
    out1 = jax.block_until_ready(gcnw_forward(adj1, x1, w1, b1, w2, b2, tm=128, tk=128))
    ref1 = reference_forward(adj1, x1, w1, b1, w2, b2)
    assert out1.shape == (N1, dim)
    # bf16 MXU inputs loosen tolerance vs the pure-f32 reference.
    assert jnp.allclose(out1, ref1, atol=1e-2, rtol=1e-2), "mismatch (fast path)"

    # Case 2: N not divisible by a usable tile -> padded fallback path.
    N2 = 200
    adj2, x2 = make_graph(k_adj2, k_x2, N2)
    out2 = jax.block_until_ready(gcnw_forward(adj2, x2, w1, b1, w2, b2, tm=128, tk=128))
    ref2 = reference_forward(adj2, x2, w1, b1, w2, b2)
    assert out2.shape == (N2, dim)
    assert jnp.allclose(out2, ref2, atol=1e-2, rtol=1e-2), "mismatch (padded path)"

    print("KERNEL_OK")
</pallas_src>

<mosaic_0001>
module attributes {stable_mosaic.version = 11 : i64} {
  func.func @gcnw_kernel(%arg0: i32, %arg1: i32, %arg2: memref<128x128xf32, #tpu.memory_space<vmem>>, %arg3: memref<128x32xbf16, #tpu.memory_space<vmem>>, %arg4: memref<32x64xf32, #tpu.memory_space<vmem>>, %arg5: memref<1x64xf32, #tpu.memory_space<vmem>>, %arg6: memref<64x128xf32, #tpu.memory_space<vmem>>, %arg7: memref<1x128xf32, #tpu.memory_space<vmem>>, %arg8: memref<128x128xf32, #tpu.memory_space<vmem>>, %arg9: memref<128x32xf32, #tpu.memory_space<vmem>>) attributes {dimension_semantics = [#tpu.dimension_semantics<parallel>, #tpu.dimension_semantics<arbitrary>], iteration_bounds = array<i64: 2, 2>, scalar_prefetch = 0 : i64, scratch_operands = 1 : i64, tpu.core_type = #tpu.core_type<tc>, window_params = [{transform_indices = @transform_0, window_bounds = array<i64: 128, 128>}, {transform_indices = @transform_1, window_bounds = array<i64: 128, 32>}, {pipeline_mode = #tpu.pipeline_mode<synchronous>, transform_indices = @transform_2, window_bounds = array<i64: 32, 64>}, {pipeline_mode = #tpu.pipeline_mode<synchronous>, transform_indices = @transform_3, window_bounds = array<i64: 1, 64>}, {pipeline_mode = #tpu.pipeline_mode<synchronous>, transform_indices = @transform_4, window_bounds = array<i64: 64, 128>}, {pipeline_mode = #tpu.pipeline_mode<synchronous>, transform_indices = @transform_5, window_bounds = array<i64: 1, 128>}, {transform_indices = @transform_6, window_bounds = array<i64: 128, 128>}]} {
    %c0_i32 = arith.constant 0 : i32
    %0 = arith.cmpi eq, %arg1, %c0_i32 : i32
    %1 = arith.extui %0 : i1 to i32
    %c0_i32_0 = arith.constant 0 : i32
    %2 = arith.cmpi ne, %1, %c0_i32_0 : i32
    scf.if %2 {
      %cst_9 = arith.constant 0.000000e+00 : f32
      %13 = vector.broadcast %cst_9 : f32 to vector<128x32xf32>
      %c0_10 = arith.constant 0 : index
      %c0_11 = arith.constant 0 : index
      %14 = vector.load %arg9[%c0_10, %c0_11] : memref<128x32xf32, #tpu.memory_space<vmem>>, vector<128x32xf32>
      tpu.vector_store %arg9[%c0_10, %c0_11], %13 {strides = array<i32>} : memref<128x32xf32, #tpu.memory_space<vmem>>, vector<128x32xf32>,
    } else {
    }
    %c0 = arith.constant 0 : index
    %c0_1 = arith.constant 0 : index
    %3 = vector.load %arg2[%c0, %c0_1] : memref<128x128xf32, #tpu.memory_space<vmem>>, vector<128x128xf32>
    %4 = arith.truncf %3 : vector<128x128xf32> to vector<128x128xbf16>
    %c0_2 = arith.constant 0 : index
    %c0_3 = arith.constant 0 : index
    %5 = vector.load %arg9[%c0_2, %c0_3] : memref<128x32xf32, #tpu.memory_space<vmem>>, vector<128x32xf32>
    %c0_4 = arith.constant 0 : index
    %c0_5 = arith.constant 0 : index
    %6 = vector.load %arg3[%c0_4, %c0_5] : memref<128x32xbf16, #tpu.memory_space<vmem>>, vector<128x32xbf16>
    %cst = arith.constant dense<0.000000e+00> : vector<128x32xf32>
    %7 = tpu.matmul %4, %6, %cst {dimension_numbers = #tpu.dot_dimension_numbers<[1], [0], [0], [1], [0, 0, 1, 1], [], []>} : vector<128x128xbf16>, vector<128x32xbf16>, vector<128x32xf32> -> vector<128x32xf32>
    %8 = arith.addf %5, %7 : vector<128x32xf32>
    %c0_6 = arith.constant 0 : index
    %c0_7 = arith.constant 0 : index
    %9 = vector.load %arg9[%c0_6, %c0_7] : memref<128x32xf32, #tpu.memory_space<vmem>>, vector<128x32xf32>
    tpu.vector_store %arg9[%c0_6, %c0_7], %8 {strides = array<i32>} : memref<128x32xf32, #tpu.memory_space<vmem>>, vector<128x32xf32>,
    %c1_i32 = arith.constant 1 : i32
    %10 = arith.cmpi eq, %arg1, %c1_i32 : i32
    %11 = arith.extui %10 : i1 to i32
    %c0_i32_8 = arith.constant 0 : i32
    %12 = arith.cmpi ne, %11, %c0_i32_8 : i32
    scf.if %12 {
      %c0_9 = arith.constant 0 : index
      %c0_10 = arith.constant 0 : index
      %13 = vector.load %arg9[%c0_9, %c0_10] : memref<128x32xf32, #tpu.memory_space<vmem>>, vector<128x32xf32>
      %c0_11 = arith.constant 0 : index
      %c0_12 = arith.constant 0 : index
      %14 = vector.load %arg4[%c0_11, %c0_12] : memref<32x64xf32, #tpu.memory_space<vmem>>, vector<32x64xf32>
      %cst_13 = arith.constant dense<0.000000e+00> : vector<128x64xf32>
      %15 = tpu.matmul %13, %14, %cst_13 {dimension_numbers = #tpu.dot_dimension_numbers<[1], [0], [0], [1], [0, 0, 1, 1], [], []>} : vector<128x32xf32>, vector<32x64xf32>, vector<128x64xf32> -> vector<128x64xf32>
      %c0_14 = arith.constant 0 : index
      %c0_15 = arith.constant 0 : index
      %16 = vector.load %arg5[%c0_14, %c0_15] : memref<1x64xf32, #tpu.memory_space<vmem>>, vector<1x64xf32>
      %17 = vector.broadcast %16 : vector<1x64xf32> to vector<128x64xf32>
      %18 = arith.addf %15, %17 : vector<128x64xf32>
      %cst_16 = arith.constant 5.000000e-01 : f32
      %19 = vector.broadcast %cst_16 : f32 to vector<128x64xf32>
      %20 = arith.mulf %19, %18 : vector<128x64xf32>
      %cst_17 = arith.constant 0.707106769 : f32
      %21 = vector.broadcast %cst_17 : f32 to vector<128x64xf32>
      %22 = arith.mulf %18, %21 : vector<128x64xf32>
      %23 = math.erf %22 : vector<128x64xf32>
      %cst_18 = arith.constant 1.000000e+00 : f32
      %24 = vector.broadcast %cst_18 : f32 to vector<128x64xf32>
      %25 = arith.addf %24, %23 : vector<128x64xf32>
      %26 = arith.mulf %20, %25 : vector<128x64xf32>
      %c0_19 = arith.constant 0 : index
      %c0_20 = arith.constant 0 : index
      %27 = vector.load %arg6[%c0_19, %c0_20] : memref<64x128xf32, #tpu.memory_space<vmem>>, vector<64x128xf32>
      %cst_21 = arith.constant dense<0.000000e+00> : vector<128x128xf32>
      %28 = tpu.matmul %26, %27, %cst_21 {dimension_numbers = #tpu.dot_dimension_numbers<[1], [0], [0], [1], [0, 0, 1, 1], [], []>} : vector<128x64xf32>, vector<64x128xf32>, vector<128x128xf32> -> vector<128x128xf32>
      %c0_22 = arith.constant 0 : index
      %c0_23 = arith.constant 0 : index
      %29 = vector.load %arg7[%c0_22, %c0_23] : memref<1x128xf32, #tpu.memory_space<vmem>>, vector<1x128xf32>
      %30 = vector.broadcast %29 : vector<1x128xf32> to vector<128x128xf32>
      %31 = arith.addf %28, %30 : vector<128x128xf32>
      %c0_24 = arith.constant 0 : index
      %c0_25 = arith.constant 0 : index
      %32 = vector.load %arg8[%c0_24, %c0_25] : memref<128x128xf32, #tpu.memory_space<vmem>>, vector<128x128xf32>
      tpu.vector_store %arg8[%c0_24, %c0_25], %31 {strides = array<i32>} : memref<128x128xf32, #tpu.memory_space<vmem>>, vector<128x128xf32>,
    } else {
    }
    return
  }
  func.func @transform_0(%arg0: i32, %arg1: i32) -> (i32, i32) {
    %c0_i32 = arith.constant 0 : i32
    return %arg0, %arg1 : i32, i32
  }
  func.func @transform_1(%arg0: i32, %arg1: i32) -> (i32, i32) {
    %c0_i32 = arith.constant 0 : i32
    %c0_i32_0 = arith.constant 0 : i32
    return %arg1, %c0_i32 : i32, i32
  }
  func.func @transform_2(%arg0: i32, %arg1: i32) -> (i32, i32) {
    %c0_i32 = arith.constant 0 : i32
    %c0_i32_0 = arith.constant 0 : i32
    %c0_i32_1 = arith.constant 0 : i32
    return %c0_i32, %c0_i32_0 : i32, i32
  }
  func.func @transform_3(%arg0: i32, %arg1: i32) -> (i32, i32) {
    %c0_i32 = arith.constant 0 : i32
    %c0_i32_0 = arith.constant 0 : i32
    %c0_i32_1 = arith.constant 0 : i32
    return %c0_i32, %c0_i32_0 : i32, i32
  }
  func.func @transform_4(%arg0: i32, %arg1: i32) -> (i32, i32) {
    %c0_i32 = arith.constant 0 : i32
    %c0_i32_0 = arith.constant 0 : i32
    %c0_i32_1 = arith.constant 0 : i32
    return %c0_i32, %c0_i32_0 : i32, i32
  }
  func.func @transform_5(%arg0: i32, %arg1: i32) -> (i32, i32) {
    %c0_i32 = arith.constant 0 : i32
    %c0_i32_0 = arith.constant 0 : i32
    %c0_i32_1 = arith.constant 0 : i32
    return %c0_i32, %c0_i32_0 : i32, i32
  }
  func.func @transform_6(%arg0: i32, %arg1: i32) -> (i32, i32) {
    %c0_i32 = arith.constant 0 : i32
    %c0_i32_0 = arith.constant 0 : i32
    return %arg0, %c0_i32 : i32, i32
  }
}

</mosaic_0001>

<bundles_post_ra>
// kernel: tpu_custom_call.1
= control target key start
LH: loop header
LB: loop body
LE: loop exit
PB: predicated region body
PF: predicated region fallthrough
CT: control target
= control target key end

     0   :  { %s3242_s0 = inlined_call_operand.hbm [shape: f32[256,256], index: 0, kind: input, shape index: {}]   ;;  %s3243_s1 = inlined_call_operand.vmem [shape: bf16[256,32], index: 1, kind: input, shape index: {}]   ;;  %s3244_s2 = inlined_call_operand.vmem [shape: f32[32,64], index: 2, kind: input, shape index: {}]   ;;  %s3245_s3 = inlined_call_operand.vmem [shape: f32[1,64], index: 3, kind: input, shape index: {}]   ;;  %s3246_s4 = inlined_call_operand.vmem [shape: f32[64,128], index: 4, kind: input, shape index: {}]   ;;  %s3247_s5 = inlined_call_operand.vmem [shape: f32[1,128], index: 5, kind: input, shape index: {}]   ;;  %s3248_s6 = inlined_call_operand.hbm [shape: f32[256,128], index: 6, kind: output, shape index: {}]  }
   0x1   :  { %3264 = sst [smem:[#allocation24_spill]] %s3248_s6 }
   0x2   :  { %11 = vsyncpa [#allocation4], 0 }
   0x3   :  { %13 = vsyncpa [#allocation4 + $0x1], 0 }
   0x4   :  { %14 = vsyncpa [#allocation5], 0 }
   0x5   :  { %16 = vsyncpa [#allocation5 + $0x1], 0  ;;  %s2103_s21 = smov 0   ;;  %s2105_s22 = smov 0  }
   0x6   :  { %s2107_s23 = smov 0   ;;  %s2109_s24 = smov 0  }
   0x7   :  { %s2111_s25 = smov 0   ;;  %s2113_s26 = smov 0  }
   0x8   :  { %s2115_s27 = smov 0   ;;  %s2117_s28 = smov 0  }
   0x9   :  { %s2119_s29 = smov 0   ;;  %s2121_s30 = smov 0  }
   0xa   :  { %s2123_s7 = smov 0  }
   0xb LB: > { %3265 = sst [smem:[#allocation9_spill]] %s2028_s23  ;;  %s1620_s8 = sadd.s32 4294967295, %s2060_s7   ;;  %s2060_s7 = sphi %s2123_s7, %s22_s7   ;;  %s2056_s30 = sphi %s2121_s30, %s3355_s30   ;;  %s2052_s29 = sphi %s2119_s29, %s3354_s29   ;;  %s2048_s28 = sphi %s2117_s28, %s3353_s28   ;;  %s2044_s27 = sphi %s2115_s27, %s3352_s27   ;;  %s2040_s26 = sphi %s2113_s26, %s3345_s26   ;;  %s2036_s25 = sphi %s2111_s25, %s3351_s25   ;;  %s2032_s24 = sphi %s2109_s24, %s3350_s24   ;;  %s2028_s23 = sphi %s2107_s23, %s3343_s23   ;;  %s2024_s22 = sphi %s2105_s22, %s3349_s22   ;;  %s2020_s21 = sphi %s2103_s21, %s3348_s21  }
   0xc   : > { %3266 = sst [smem:[#allocation10_spill]] %s2040_s26  ;;  %s1621_s9 = sadd.s32 4294967294, %s2060_s7  }
   0xd   : > { %s31_s10 = sadd.s32 1, %s2052_s29  ;;  %s34_s11 = sadd.s32 1, %s2056_s30 }
   0xe   : > { %p32_p0 = scmp.ge.s32.totalorder %s31_s10, 2  ;;  %s43_s12 = sadd.s32 1, %s2040_s26 }
   0xf   : > { %p50_p1 = scmp.ne.s32.totalorder %s2040_s26, %s2036_s25  ;;  %p51_p2 = scmp.eq.s32.totalorder %s2060_s7, 0 }
  0x10   : > { %s3357_s10 = smov (%p32_p0, %s31_s10), 0  ;;  %s3359_s11 = smov (!%p32_p0, %s34_s11), %s2056_s30 }
  0x11   : > { %3267 = sst [smem:[#allocation11_spill]] %s3357_s10  ;;  %s39_s13 = ssub.s32 %s2052_s29, %s3357_s10 }
  0x12   : > { %p2169_p3 = por %p51_p2, %p50_p1  ;;  %p36_p4 = scmp.ge.s32.totalorder %s3359_s11, 2 }
  0x13   : > { %p56_p5 = scmp.ne.s32.totalorder %s2036_s25, %s2032_s24  ;;  %p57_p6 = scmp.eq.s32.totalorder %s1620_s8, 0 }
  0x14   : > { %s179_s15 = sadd.s32 1, %s2028_s23  ;;  %s3361_s11 = smov (%p36_p4, %s3359_s11), 0 }
  0x15   : > { %3269 = sst [smem:[#allocation12_spill]] %s3361_s11  ;;  %p2177_p7 = por %p57_p6, %p56_p5 }
  0x16   : > { %p189_p8 = scmp.ne.s32.totalorder %s2028_s23, %s2024_s22  ;;  %s38_s17 = ssub.s32 %s2056_s30, %s3361_s11 }
  0x17   : > { %p190_p9 = scmp.eq.s32.totalorder %s1620_s8, 3  ;;  %s40_s18 = sor.u32 %s39_s13, %s38_s17 }
  0x18   : > { %p177_p10 = scmp.eq.s32.totalorder %s38_s17, 0  ;;  %p41_p11 = scmp.eq.s32.totalorder %s40_s18, 0 }
  0x19   : > { %p2185_p12 = por %p190_p9, %p189_p8  ;;  %p195_p13 = scmp.ne.s32.totalorder %s2024_s22, %s2020_s21 }
  0x1a   : > { %s2190_s20 = scalar_select %p177_p10, %s2028_s23, %s179_s15  }
  0x1b   : > { %s3271_s19 = scalar_select %p2185_p12, 1, 0 }
  0x1c   : > { %3273 = sst [smem:[#allocation14_spill]] %s2190_s20  ;;  %p196_p0 = scmp.eq.s32.totalorder %s1621_s9, 3 }
  0x1d   : > { %3272 = sst [smem:[#allocation13_spill]] %s3271_s19  ;;  %p1778_p1 = scmp.lt.s32.totalorder %s2060_s7, 4 }
  0x1e   : > { %s2193_s24 = scalar_select %p41_p11, %s2040_s26, %s43_s12  }
  0x1f   : > { %p2198_p2 = por %p196_p0, %p195_p13  ;;  %s228_s8 = sand.u32 1, %s2040_s26  }
  0x20   : > { %3274 = sst [smem:[#allocation15_spill]] %s2193_s24  ;;  %s1624_s13 = sshll.u32 %s228_s8, 7 }
  0x21   : > { %s3275_s10 = scalar_select %p2198_p2, 1, 0 }
  0x22   : > { %s1720_s17 = sshll.u32 %s2056_s30, 5  ;;  %s232_s11 = scalar_lea.vmem [#allocation3], %s1624_s13 }
  0x23   : > { %3276 = sst [smem:[#allocation16_spill]] %s3275_s10  ;;  %s237_s18 = sadd.s32 %s2052_s29, %s1720_s17 }
  0x24   : > { %s242_s6 = sshll.u32 %s232_s11, 4  ;;  %s1627_s19 = sshll.u32 %s237_s18, 3  ;;  %s243_s6 = int_to_ptr.vmem [resolvable:$true] %s242_s6 }
  0x25   : > { %s239_s24 = scalar_lea.hbm %s3242_s0, %s1627_s19  ;;  %p1771_p4 = pnand %p1778_p1, %p2169_p3 }
  0x26   : > { %s240_s9 = sshll.u32 %s239_s24, 4  ;;  %s229_s20 = scalar_lea.sflag [#allocation4], %s228_s8  ;;  %s241_s9 = int_to_ptr.hbm [resolvable:$true] %s240_s9 }
  0x27   : > { %s2062_s23 = smov 256   ;;  %s2063_s26 = smov 128  }
  0x28   : > { %s2064_s10 = smov 8   ;;  %p1628_p5 = scmp.ge.s32.totalorder %s2060_s7, 1 }
  0x29   : > { %1773 = dma.hbm_to_vmem [thread:$0]  (!%p1771_p4), %s241_s9, 2048, %s243_s6, %s229_s20, %s2062_s23, %s2063_s26, %s2064_s10  }
  0x2a   : > { %p259_p6 = scmp.lt.s32.totalorder %s2060_s7, 5 }
  0x2c   : > { %p260_p8 = pnand %p1628_p5, %p259_p6 }
  0x2d   : > { %s265_s11 = sand.u32 (!%p260_p8), 1, %s2036_s25  }
  0x2e   : > { %263 = sbr.rel (%p260_p8) target bundleno = 772 (0x304), region = 44  ;;  %s1629_s13 = sshll.u32 (!%p260_p8), %s265_s11, 7 }
  0x2f   : > { %s266_s17 = scalar_lea.sflag (!%p260_p8), [#allocation4], %s265_s11  ;;  %s2213_s18 = scalar_lea.vmem (!%p260_p8), [#allocation3], %s1629_s13 }
  0x33   : > { %2011 = dma.done.wait (%p2177_p7), %s266_s17, 2048  }
  0x34   : > { %2013 = vsyncadd (%p2177_p7), %s266_s17, 4294965248  ;;  %s301_s6 = sand.u32 1, %s2024_s22   ;;  %s1631_s23 = sshll.u32 %s2044_s27, 4 }
  0x35   : > { %s1630_s26 = sshll.u32 %s301_s6, 7  ;;  %p306_p3 = scmp.lt.s32.totalorder %s1631_s23, 31 }
  0x36   : > { %s2228_s24 = scalar_lea.vmem [#allocation6], %s1630_s26  ;;  %p1633_p9 = scmp.ne.s32.totalorder %s2044_s27, 0 }
  0x37   : > { %s3363_s23 = smov (!%p306_p3, %s1631_s23), 31 }
  0x38   : > { %s1632_s10 = sshll.u32 %s3363_s23, 2  ;;  %315 = sbr.rel (%p1633_p9) target bundleno = 78 (0x4e), region = 52 }
  0x39   : > { %s2226_s20 = scalar_lea.vmem %s3243_s1, %s1632_s10 }
  0x3d   : > { %vm316_vm0 = vcmask 261120   ;;  %v2065_v0 = vmov 0.0  }
  0x3e   : > { %317 = vst.msk [vmem:[#allocation2] sm:$0xff] %vm316_vm0, %v2065_v0 }
  0x3f   : > { %318 = vst.msk [vmem:[#allocation2 + $0x8] sm:$0xff] %vm316_vm0, %v2065_v0 }
  0x40   : > { %319 = vst.msk [vmem:[#allocation2 + $0x10] sm:$0xff] %vm316_vm0, %v2065_v0 }
  0x41   : > { %320 = vst.msk [vmem:[#allocation2 + $0x18] sm:$0xff] %vm316_vm0, %v2065_v0 }
  0x42   : > { %321 = vst.msk [vmem:[#allocation2 + $0x20] sm:$0xff] %vm316_vm0, %v2065_v0 }
  0x43   : > { %322 = vst.msk [vmem:[#allocation2 + $0x28] sm:$0xff] %vm316_vm0, %v2065_v0 }
  0x44   : > { %323 = vst.msk [vmem:[#allocation2 + $0x30] sm:$0xff] %vm316_vm0, %v2065_v0 }
  0x45   : > { %324 = vst.msk [vmem:[#allocation2 + $0x38] sm:$0xff] %vm316_vm0, %v2065_v0 }
  0x46   : > { %325 = vst.msk [vmem:[#allocation2 + $0x40] sm:$0xff] %vm316_vm0, %v2065_v0 }
  0x47   : > { %326 = vst.msk [vmem:[#allocation2 + $0x48] sm:$0xff] %vm316_vm0, %v2065_v0 }
  0x48   : > { %327 = vst.msk [vmem:[#allocation2 + $0x50] sm:$0xff] %vm316_vm0, %v2065_v0 }
  0x49   : > { %328 = vst.msk [vmem:[#allocation2 + $0x58] sm:$0xff] %vm316_vm0, %v2065_v0 }
  0x4a   : > { %329 = vst.msk [vmem:[#allocation2 + $0x60] sm:$0xff] %vm316_vm0, %v2065_v0 }
  0x4b   : > { %330 = vst.msk [vmem:[#allocation2 + $0x68] sm:$0xff] %vm316_vm0, %v2065_v0 }
  0x4c   : > { %331 = vst.msk [vmem:[#allocation2 + $0x70] sm:$0xff] %vm316_vm0, %v2065_v0 }
  0x4d   : > { %332 = vst.msk [vmem:[#allocation2 + $0x78] sm:$0xff] %vm316_vm0, %v2065_v0 }
  0x4e PF: > { %v1728_v1 = vld [vmem:[%s2226_s20 + $0x38] sm:$0xff]  ;;  %v1727_v2 = vld [vmem:[%s2226_s20 + $0x30] sm:$0xff]  ;;  %v1726_v3 = vld [vmem:[%s2226_s20 + $0x28] sm:$0xff]  ;;  %vm502_vm1 = vcmask 261120   ;;  %p1666_p7 = scmp.ne.s32.totalorder %s2044_s27, 1 }
  0x4f   : > { %437 = vmatpush.bf16.msra.mxu0 %v1728_v1  ;;  %1730 = vmatpush.bf16.msra.mxu1 %v1728_v1  ;;  %v1725_v4 = vld [vmem:[%s2226_s20 + $0x20] sm:$0xff]  ;;  %v1724_v5 = vld [vmem:[%s2226_s20 + $0x18] sm:$0xff]  ;;  %v1723_v6 = vld [vmem:[%s2226_s20 + $0x10] sm:$0xff] }
  0x50   : > { %1731 = vmatpush.bf16.msra.mxu2 %v1728_v1  ;;  %1732 = vmatpush.bf16.msra.mxu3 %v1728_v1  ;;  %v1722_v7 = vld [vmem:[%s2226_s20 + $0x8] sm:$0xff]  ;;  %v1721_v8 = vld [vmem:[%s2226_s20] sm:$0xff]  ;;  %v335_v21 = vld [vmem:[%s2213_s18 + $0x10] sm:$0xff] }
  0x51   : > { %v333_v9 = vld [vmem:[%s2213_s18] sm:$0xff]  ;;  %v334_v10 = vld [vmem:[%s2213_s18 + $0x8] sm:$0xff]  ;;  %v336_v22 = vld [vmem:[%s2213_s18 + $0x18] sm:$0xff] }
  0x52   : > { %v337_v11 = vld [vmem:[%s2213_s18 + $0x20] sm:$0xff]  ;;  %v338_v12 = vld [vmem:[%s2213_s18 + $0x28] sm:$0xff]  ;;  %v349_v17 = vpack.c.bf16 %v334_v10, %v333_v9  ;;  %v339_v23 = vld [vmem:[%s2213_s18 + $0x30] sm:$0xff]  ;;  %v350_v29 = vpack.c.bf16 %v336_v22, %v335_v21 }
  0x53   : > { %438 = vmatpush.bf16.msra.mxu0 %v1727_v2  ;;  %1733 = vmatpush.bf16.msra.mxu1 %v1727_v2  ;;  %v341_v13 = vld [vmem:[%s2213_s18 + $0x40] sm:$0xff]  ;;  %v342_v14 = vld [vmem:[%s2213_s18 + $0x48] sm:$0xff]  ;;  %v351_v18 = vpack.c.bf16 %v338_v12, %v337_v11  ;;  %v340_v24 = vld [vmem:[%s2213_s18 + $0x38] sm:$0xff] }
  0x54   : > { %1734 = vmatpush.bf16.msra.mxu2 %v1727_v2  ;;  %1735 = vmatpush.bf16.msra.mxu3 %v1727_v2  ;;  %v345_v15 = vld [vmem:[%s2213_s18 + $0x60] sm:$0xff]  ;;  %v346_v16 = vld [vmem:[%s2213_s18 + $0x68] sm:$0xff]  ;;  %v353_v19 = vpack.c.bf16 %v342_v14, %v341_v13  ;;  %v343_v25 = vld [vmem:[%s2213_s18 + $0x50] sm:$0xff]  ;;  %v352_v30 = vpack.c.bf16 %v340_v24, %v339_v23 }
  0x55   : > { %v355_v20 = vpack.c.bf16 %v346_v16, %v345_v15  ;;  %v344_v26 = vld [vmem:[%s2213_s18 + $0x58] sm:$0xff]  ;;  %v347_v27 = vld [vmem:[%s2213_s18 + $0x70] sm:$0xff]  ;;  %v357_v33 = vld [vmem:[#allocation2] sm:$0xff] }
  0x56   : > { %v348_v28 = vld [vmem:[%s2213_s18 + $0x78] sm:$0xff]  ;;  %v354_v31 = vpack.c.bf16 %v344_v26, %v343_v25  ;;  %v361_v34 = vld [vmem:[#allocation2 + $0x20] sm:$0xff]  ;;  %v358_v41 = vld [vmem:[#allocation2 + $0x8] sm:$0xff] }
  0x57   : > { %439 = vmatpush.bf16.msra.mxu0 %v1726_v3  ;;  %1736 = vmatpush.bf16.msra.mxu1 %v1726_v3  ;;  %v356_v32 = vpack.c.bf16 %v348_v28, %v347_v27  ;;  %v365_v39 = vld [vmem:[#allocation2 + $0x40] sm:$0xff]  ;;  %v362_v42 = vld [vmem:[#allocation2 + $0x28] sm:$0xff]  ;;  %v359_v53 = vld [vmem:[#allocation2 + $0x10] sm:$0xff] }
  0x58   : > { %1737 = vmatpush.bf16.msra.mxu2 %v1726_v3  ;;  %1738 = vmatpush.bf16.msra.mxu3 %v1726_v3  ;;  %v369_v40 = vld [vmem:[#allocation2 + $0x60] sm:$0xff]  ;;  %v366_v51 = vld [vmem:[#allocation2 + $0x48] sm:$0xff]  ;;  %v363_v54 = vld [vmem:[#allocation2 + $0x30] sm:$0xff] }
  0x59   : > { %v370_v52 = vld [vmem:[#allocation2 + $0x68] sm:$0xff]  ;;  %v367_v63 = vld [vmem:[#allocation2 + $0x50] sm:$0xff]  ;;  %v360_v1 = vld [vmem:[#allocation2 + $0x18] sm:$0xff] }
  0x5a   : > { %v371_v0 = vld [vmem:[#allocation2 + $0x70] sm:$0xff]  ;;  %v364_v2 = vld [vmem:[#allocation2 + $0x38] sm:$0xff] }
  0x5b   : > { %440 = vmatpush.bf16.msra.mxu0 %v1725_v4  ;;  %1739 = vmatpush.bf16.msra.mxu1 %v1725_v4  ;;  %v368_v11 = vld [vmem:[#allocation2 + $0x58] sm:$0xff] }
  0x5c   : > { %1740 = vmatpush.bf16.msra.mxu2 %v1725_v4  ;;  %1741 = vmatpush.bf16.msra.mxu3 %v1725_v4  ;;  %v372_v12 = vld [vmem:[#allocation2 + $0x78] sm:$0xff] }
  0x5f   : > { %441 = vmatpush.bf16.msra.mxu0 %v1724_v5  ;;  %1742 = vmatpush.bf16.msra.mxu1 %v1724_v5 }
  0x60   : > { %1743 = vmatpush.bf16.msra.mxu2 %v1724_v5  ;;  %1744 = vmatpush.bf16.msra.mxu3 %v1724_v5 }
  0x63   : > { %442 = vmatpush.bf16.msra.mxu0 %v1723_v6  ;;  %1745 = vmatpush.bf16.msra.mxu1 %v1723_v6 }
  0x64   : > { %1746 = vmatpush.bf16.msra.mxu2 %v1723_v6  ;;  %1747 = vmatpush.bf16.msra.mxu3 %v1723_v6 }
  0x67   : > { %443 = vmatpush.bf16.msra.mxu0 %v1722_v7  ;;  %1748 = vmatpush.bf16.msra.mxu1 %v1722_v7 }
  0x68   : > { %1749 = vmatpush.bf16.msra.mxu2 %v1722_v7  ;;  %1750 = vmatpush.bf16.msra.mxu3 %v1722_v7 }
  0x6b   : > { %444 = vmatpush.bf16.msra.mxu0 %v1721_v8  ;;  %1751 = vmatpush.bf16.msra.mxu1 %v1721_v8 }
  0x6c   : > { %1752 = vmatpush.bf16.msra.mxu2 %v1721_v8  ;;  %1753 = vmatpush.bf16.msra.mxu3 %v1721_v8 }
  0x6e   : > { %445 = vmatmul.bf16.vlgmr.msra.gmra.mxu0 %v349_v17  ;;  %455 = vmatmul.bf16.vlgmr.msra.gmra.mxu1 %v351_v18 }
  0x6f   : > { %465 = vmatmul.bf16.vlgmr.msra.gmra.mxu2 %v353_v19  ;;  %475 = vmatmul.bf16.vlgmr.msra.gmra.mxu3 %v355_v20 }
  0x7e   : > { %450 = vmatmul.bf16.gmra.mxu0 %v350_v29  ;;  %460 = vmatmul.bf16.gmra.mxu1 %v352_v30 }
  0x7f   : > { %470 = vmatmul.bf16.gmra.mxu2 %v354_v31  ;;  %480 = vmatmul.bf16.gmra.mxu3 %v356_v32 }
  0xeb   : > { %v446_v35 = vpop.f32.mrf.mxu0  ;;  %v456_v36 = vpop.f32.mrf.mxu1 }
  0xec   : > { %v486_v37 = vadd.f32 %v446_v35, %v357_v33  ;;  %v490_v38 = vadd.f32 %v456_v36, %v361_v34 }
  0xee   : > { %503 = vst.msk [vmem:[#allocation2] sm:$0xff] %vm502_vm1, %v486_v37 }
  0xef   : > { %507 = vst.msk [vmem:[#allocation2 + $0x20] sm:$0xff] %vm502_vm1, %v490_v38 }
  0xf2   : > { %v466_v43 = vpop.f32.mrf.mxu2  ;;  %v476_v44 = vpop.f32.mrf.mxu3 }
  0xf3   : > { %v494_v45 = vadd.f32 %v466_v43, %v365_v39  ;;  %v498_v46 = vadd.f32 %v476_v44, %v369_v40  ;;  %v448_v47 = vpop.f32.mrf.mxu0  ;;  %v458_v48 = vpop.f32.mrf.mxu1 }
  0xf4   : > { %v487_v49 = vadd.f32 %v448_v47, %v358_v41  ;;  %v491_v50 = vadd.f32 %v458_v48, %v362_v42 }
  0xf5   : > { %511 = vst.msk [vmem:[#allocation2 + $0x40] sm:$0xff] %vm502_vm1, %v494_v45 }
  0xf6   : > { %515 = vst.msk [vmem:[#allocation2 + $0x60] sm:$0xff] %vm502_vm1, %v498_v46 }
  0xf7   : > { %504 = vst.msk [vmem:[#allocation2 + $0x8] sm:$0xff] %vm502_vm1, %v487_v49 }
  0xf8   : > { %508 = vst.msk [vmem:[#allocation2 + $0x28] sm:$0xff] %vm502_vm1, %v491_v50 }
  0xfa   : > { %v468_v55 = vpop.f32.mrf.mxu2  ;;  %v478_v56 = vpop.f32.mrf.mxu3 }
  0xfb   : > { %v495_v57 = vadd.f32 %v468_v55, %v366_v51  ;;  %v499_v58 = vadd.f32 %v478_v56, %v370_v52  ;;  %v451_v59 = vpop.f32.mrf.mxu0  ;;  %v461_v60 = vpop.f32.mrf.mxu1 }
  0xfc   : > { %v488_v61 = vadd.f32 %v451_v59, %v359_v53  ;;  %v492_v62 = vadd.f32 %v461_v60, %v363_v54 }
  0xfd   : > { %512 = vst.msk [vmem:[#allocation2 + $0x48] sm:$0xff] %vm502_vm1, %v495_v57 }
  0xfe   : > { %516 = vst.msk [vmem:[#allocation2 + $0x68] sm:$0xff] %vm502_vm1, %v499_v58 }
  0xff   : > { %505 = vst.msk [vmem:[#allocation2 + $0x10] sm:$0xff] %vm502_vm1, %v488_v61 }
 0x100   : > { %509 = vst.msk [vmem:[#allocation2 + $0x30] sm:$0xff] %vm502_vm1, %v492_v62 }
 0x102   : > { %v471_v3 = vpop.f32.mrf.mxu2  ;;  %v481_v4 = vpop.f32.mrf.mxu3 }
 0x103   : > { %v496_v5 = vadd.f32 %v471_v3, %v367_v63  ;;  %v500_v6 = vadd.f32 %v481_v4, %v371_v0  ;;  %v453_v7 = vpop.f32.mrf.mxu0  ;;  %v463_v8 = vpop.f32.mrf.mxu1 }
 0x104   : > { %v489_v9 = vadd.f32 %v453_v7, %v360_v1  ;;  %v493_v10 = vadd.f32 %v463_v8, %v364_v2 }
 0x105   : > { %513 = vst.msk [vmem:[#allocation2 + $0x50] sm:$0xff] %vm502_vm1, %v496_v5 }
 0x106   : > { %517 = vst.msk [vmem:[#allocation2 + $0x70] sm:$0xff] %vm502_vm1, %v500_v6 }
 0x107   : > { %506 = vst.msk [vmem:[#allocation2 + $0x18] sm:$0xff] %vm502_vm1, %v489_v9 }
 0x108   : > { %510 = vst.msk [vmem:[#allocation2 + $0x38] sm:$0xff] %vm502_vm1, %v493_v10 }
 0x10a   : > { %v473_v13 = vpop.f32.mrf.mxu2  ;;  %v483_v14 = vpop.f32.mrf.mxu3  ;;  %522 = sbr.rel (%p1666_p7) target bundleno = 751 (0x2ef), region = 56 }
 0x10b   : > { %v497_v15 = vadd.f32 %v473_v13, %v368_v11  ;;  %v501_v16 = vadd.f32 %v483_v14, %v372_v12 }
 0x10d   : > { %514 = vst.msk [vmem:[#allocation2 + $0x58] sm:$0xff] %vm502_vm1, %v497_v15 }
 0x10e   : > { %518 = vst.msk [vmem:[#allocation2 + $0x78] sm:$0xff] %vm502_vm1, %v501_v16 }
 0x10f   : > { %v542_v17 = vld [vmem:[%s3244_s2 + $0x18] sm:$0xff]  ;;  %v541_v18 = vld [vmem:[%s3244_s2 + $0x10] sm:$0xff]  ;;  %v540_v19 = vld [vmem:[%s3244_s2 + $0x8] sm:$0xff]  ;;  %vm1376_vm15 = vcmask 523264  }
 0x110   : > { %607 = vmatpush.msra.mxu0 %v542_v17  ;;  %1754 = vmatpush.msra.mxu3 %v542_v17  ;;  %v539_v20 = vld [vmem:[%s3244_s2] sm:$0xff]  ;;  %v532_v22 = vld [vmem:[#allocation2 + $0x48] sm:$0xff]  ;;  %v533_v24 = vld [vmem:[#allocation2 + $0x50] sm:$0xff] }
 0x111   : > { %v523_v21 = vld [vmem:[#allocation2] sm:$0xff]  ;;  %v524_v23 = vld [vmem:[#allocation2 + $0x8] sm:$0xff]  ;;  %v525_v25 = vld [vmem:[#allocation2 + $0x10] sm:$0xff] }
 0x112   : > { %608 = vmatpush.msra.mxu0 %v541_v18  ;;  %1755 = vmatpush.msra.mxu3 %v541_v18  ;;  %v526_v27 = vld [vmem:[#allocation2 + $0x18] sm:$0xff]  ;;  %v535_v28 = vld [vmem:[#allocation2 + $0x60] sm:$0xff]  ;;  %v536_v30 = vld [vmem:[#allocation2 + $0x68] sm:$0xff] }
 0x113   : > { %v527_v29 = vld [vmem:[#allocation2 + $0x20] sm:$0xff]  ;;  %v528_v31 = vld [vmem:[#allocation2 + $0x28] sm:$0xff]  ;;  %v537_v32 = vld [vmem:[#allocation2 + $0x70] sm:$0xff] }
 0x114   : > { %609 = vmatpush.msra.mxu0 %v540_v19  ;;  %1756 = vmatpush.msra.mxu3 %v540_v19  ;;  %v534_v26 = vld [vmem:[#allocation2 + $0x58] sm:$0xff]  ;;  %v529_v33 = vld [vmem:[#allocation2 + $0x30] sm:$0xff]  ;;  %v531_v36 = vld [vmem:[#allocation2 + $0x40] sm:$0xff] }
 0x115   : > { %v538_v34 = vld [vmem:[#allocation2 + $0x78] sm:$0xff]  ;;  %v2319_v37 = vld [vmem:[%s3245_s3] ss:$0 sm:$0xff]  ;;  %v1370_v18 = vld [vmem:[%s3246_s4 + $0x30] sm:$0xff] }
 0x116   : > { %610 = vmatpush.msra.mxu0 %v539_v20  ;;  %1757 = vmatpush.msra.mxu3 %v539_v20  ;;  %v530_v35 = vld [vmem:[#allocation2 + $0x38] sm:$0xff] }
 0x117   : > { %1667 = vmatmul.msk.f32.vlgmr.msra.gmra.mxu0 %vm502_vm1, %v523_v21  ;;  %1676 = vmatmul.msk.f32.vlgmr.msra.gmra.mxu3 %vm502_vm1, %v532_v22  ;;  %v1371_v51 = vld [vmem:[%s3246_s4 + $0x38] sm:$0xff] }
 0x118   : > { %1433 = vmatpush.msra.mxu1 %v1371_v51  ;;  %1758 = vmatpush.msra.mxu2 %v1371_v51 }
 0x11a   : > { %1434 = vmatpush.msra.mxu1 %v1370_v18  ;;  %1759 = vmatpush.msra.mxu2 %v1370_v18 }
 0x11f   : > { %1668 = vmatmul.msk.f32.gmra.mxu0 %vm502_vm1, %v524_v23  ;;  %1677 = vmatmul.msk.f32.gmra.mxu3 %vm502_vm1, %v533_v24  ;;  %v1369_v24 = vld [vmem:[%s3246_s4 + $0x28] sm:$0xff] }
 0x120   : > { %1435 = vmatpush.msra.mxu1 %v1369_v24  ;;  %1760 = vmatpush.msra.mxu2 %v1369_v24  ;;  %v1366_v24 = vld [vmem:[%s3246_s4 + $0x10] sm:$0xff] }
 0x127   : > { %1669 = vmatmul.msk.f32.gmra.mxu0 %vm502_vm1, %v525_v25  ;;  %1678 = vmatmul.msk.f32.gmra.mxu3 %vm502_vm1, %v534_v26 }
 0x12f   : > { %1670 = vmatmul.msk.f32.gmra.mxu0 %vm502_vm1, %v526_v27  ;;  %1679 = vmatmul.msk.f32.gmra.mxu3 %vm502_vm1, %v535_v28  ;;  %v1368_v28 = vld [vmem:[%s3246_s4 + $0x20] sm:$0xff] }
 0x130   : > { %1436 = vmatpush.msra.mxu1 %v1368_v28  ;;  %1761 = vmatpush.msra.mxu2 %v1368_v28 }
 0x137   : > { %1671 = vmatmul.msk.f32.gmra.mxu0 %vm502_vm1, %v527_v29  ;;  %1680 = vmatmul.msk.f32.gmra.mxu3 %vm502_vm1, %v536_v30 }
 0x13f   : > { %1672 = vmatmul.msk.f32.gmra.mxu0 %vm502_vm1, %v528_v31  ;;  %1681 = vmatmul.msk.f32.gmra.mxu3 %vm502_vm1, %v537_v32 }
 0x147   : > { %1673 = vmatmul.msk.f32.gmra.mxu0 %vm502_vm1, %v529_v33  ;;  %1682 = vmatmul.msk.f32.gmra.mxu3 %vm502_vm1, %v538_v34  ;;  %v1367_v34 = vld [vmem:[%s3246_s4 + $0x18] sm:$0xff] }
 0x148   : > { %1437 = vmatpush.msra.mxu1 %v1367_v34  ;;  %1762 = vmatpush.msra.mxu2 %v1367_v34 }
 0x14a   : > { %1438 = vmatpush.msra.mxu1 %v1366_v24  ;;  %1763 = vmatpush.msra.mxu2 %v1366_v24 }
 0x14f   : > { %1674 = vmatmul.msk.f32.gmra.mxu0 %vm502_vm1, %v530_v35 }
 0x157   : > { %1675 = vmatmul.msk.f32.gmra.mxu0 %vm502_vm1, %v531_v36 }
 0x194   : > { %v612_v38 = vpop.f32.mrf.mxu0 }
 0x195   : > { %v2322_v39 = vadd.f32 %v2319_v37, %v612_v38 }
 0x197   : > { %v2325_v40 = vmul.f32 0.70710677, %v2322_v39 }
 0x199   : > { %v692_v43 = vmul.f32 %v2325_v40, %v2325_v40 }
 0x19a   : > { %v639_v56 = vpop.f32.mrf.mxu3 }
 0x19b   : > { %v2335_v45 = vmin.f32 %v692_v43, 16.0  ;;  %v2357_v60 = vadd.f32 %v2319_v37, %v639_v56 }
 0x19c   : > { %v615_v41 = vpop.f32.mrf.mxu0 }
 0x19d   : > { %v2328_v42 = vadd.f32 %v2319_v37, %v615_v41  ;;  %v705_v48 = vmul.f32 3.8918573e-05, %v2335_v45  ;;  %v694_v62 = vmul.f32 2.1237322e-06, %v2335_v45  ;;  %v2367_v2 = vmul.f32 0.70710677, %v2357_v60 }
 0x19f   : > { %v2333_v44 = vmul.f32 0.70710677, %v2328_v42  ;;  %v706_v50 = vadd.f32 0.001143296, %v705_v48  ;;  %v695_v4 = vadd.f32 0.00028619796, %v694_v62  ;;  %v1052_v9 = vmul.f32 %v2367_v2, %v2367_v2 }
 0x1a1   : > { %v732_v47 = vmul.f32 %v2333_v44, %v2333_v44  ;;  %v707_v55 = vmul.f32 %v706_v50, %v2335_v45  ;;  %v696_v11 = vmul.f32 %v695_v4, %v2335_v45  ;;  %v2382_v16 = vmin.f32 %v1052_v9, 16.0 }
 0x1a3   : > { %v2340_v49 = vmin.f32 %v732_v47, 16.0  ;;  %v708_v61 = vadd.f32 0.014752088, %v707_v55  ;;  %v697_v19 = vadd.f32 0.0036580483, %v696_v11 }
 0x1a4   : > { %v618_v46 = vpop.f32.mrf.mxu0  ;;  %v1065_v26 = vmul.f32 3.8918573e-05, %v2382_v16  ;;  %v1054_v43 = vmul.f32 2.1237322e-06, %v2382_v16 }
 0x1a5   : > { %v745_v52 = vmul.f32 3.8918573e-05, %v2340_v49  ;;  %v2347_v53 = vadd.f32 %v2319_v37, %v618_v46  ;;  %v709_v3 = vmul.f32 %v708_v61, %v2335_v45  ;;  %v734_v5 = vmul.f32 2.1237322e-06, %v2340_v49 }
 0x1a6   : > { %v698_v30 = vmul.f32 %v697_v19, %v2335_v45  ;;  %v1066_v36 = vadd.f32 0.001143296, %v1065_v26  ;;  %v1055_v61 = vadd.f32 0.00028619796, %v1054_v43  ;;  %v1364_v43 = vld [vmem:[%s3246_s4] sm:$0xff] }
 0x1a7   : > { %v746_v57 = vadd.f32 0.001143296, %v745_v52  ;;  %v2354_v59 = vmul.f32 0.70710677, %v2347_v53  ;;  %v710_v10 = vadd.f32 0.112945676, %v709_v3  ;;  %v642_v52 = vpop.f32.mrf.mxu3 }
 0x1a8   : > { %v735_v12 = vadd.f32 0.00028619796, %v734_v5  ;;  %v699_v47 = vadd.f32 0.05243302, %v698_v30  ;;  %v1067_v55 = vmul.f32 %v1066_v36, %v2382_v16  ;;  %v1056_v11 = vmul.f32 %v1055_v61, %v2382_v16 }
 0x1a9   : > { %v747_v63 = vmul.f32 %v746_v57, %v2340_v49  ;;  %v772_v1 = vmul.f32 %v2354_v59, %v2354_v59  ;;  %v711_v17 = vmul.f32 %v710_v10, %v2335_v45  ;;  %v2475_v61 = vmul.f32 0.5, %v2347_v53 }
 0x1aa   : > { %v736_v20 = vmul.f32 %v735_v12, %v2340_v49 }
 0x1ab   : > { %v748_v6 = vadd.f32 0.014752088, %v747_v63  ;;  %v2373_v8 = vmin.f32 %v772_v1, 16.0  ;;  %v712_v27 = vadd.f32 0.4994258, %v711_v17  ;;  %v2420_v63 = vadd.f32 %v2319_v37, %v642_v52 }
 0x1ac   : > { %v621_v54 = vpop.f32.mrf.mxu0  ;;  %v737_v31 = vadd.f32 0.0036580483, %v736_v20  ;;  %v700_v1 = vmul.f32 %v699_v47, %v2335_v45 }
 0x1ad   : > { %v2351_v58 = vadd.f32 %v2319_v37, %v621_v54  ;;  %v749_v13 = vmul.f32 %v748_v6, %v2340_v49  ;;  %v785_v15 = vmul.f32 3.8918573e-05, %v2373_v8  ;;  %v713_v38 = vmul.f32 %v712_v27, %v2335_v45 }
 0x1ae   : > { %v774_v41 = vmul.f32 2.1237322e-06, %v2373_v8  ;;  %v738_v48 = vmul.f32 %v737_v31, %v2340_v49 }
 0x1af   : > { %v2362_v0 = vmul.f32 0.70710677, %v2351_v58  ;;  %v750_v21 = vadd.f32 0.112945676, %v749_v13  ;;  %v786_v25 = vadd.f32 0.001143296, %v785_v15 }
 0x1b0   : > { %v2415_v56 = vadd.f32 1.0, %v713_v38  ;;  %v775_v57 = vadd.f32 0.00028619796, %v774_v41  ;;  %v739_v3 = vadd.f32 0.05243302, %v738_v48  ;;  %v2454_v38 = vmul.f32 0.5, %v2322_v39 }
 0x1b1   : > { %v812_v7 = vmul.f32 %v2362_v0, %v2362_v0  ;;  %v751_v32 = vmul.f32 %v750_v21, %v2340_v49  ;;  %v787_v35 = vmul.f32 %v786_v25, %v2373_v8  ;;  %v2432_v13 = vmul.f32 0.70710677, %v2420_v63 }
 0x1b2   : > { %1876 = vrcp.f32 %v2415_v56  ;;  %v776_v9 = vmul.f32 %v775_v57, %v2373_v8  ;;  %v701_v15 = vadd.f32 0.18741608, %v700_v1  ;;  %v740_v17 = vmul.f32 %v739_v3, %v2340_v49 }
 0x1b3   : > { %v2379_v14 = vmin.f32 %v812_v7, 16.0  ;;  %v752_v50 = vadd.f32 0.4994258, %v751_v32  ;;  %v788_v54 = vadd.f32 0.014752088, %v787_v35  ;;  %v1092_v27 = vmul.f32 %v2432_v13, %v2432_v13 }
 0x1b4   : > { %v624_v23 = vpop.f32.mrf.mxu0  ;;  %v1068_v7 = vadd.f32 0.014752088, %v1067_v55  ;;  %v1057_v25 = vadd.f32 0.0036580483, %v1056_v11  ;;  %v702_v30 = vmul.f32 %v701_v15, %v2335_v45  ;;  %v741_v31 = vadd.f32 0.18741608, %v740_v17 }
 0x1b5   : > { %v825_v22 = vmul.f32 3.8918573e-05, %v2379_v14  ;;  %v2398_v29 = vadd.f32 %v2319_v37, %v624_v23  ;;  %v753_v4 = vmul.f32 %v752_v50, %v2340_v49  ;;  %v789_v6 = vmul.f32 %v788_v54, %v2373_v8 }
 0x1b6   : > { %v814_v10 = vmul.f32 2.1237322e-06, %v2379_v14  ;;  %v1069_v21 = vmul.f32 %v1068_v7, %v2382_v16  ;;  %v1058_v48 = vmul.f32 %v1057_v25, %v2382_v16  ;;  %v703_v39 = vadd.f32 1.1283791, %v702_v30 }
 0x1b7   : > { %v826_v33 = vadd.f32 0.001143296, %v825_v22  ;;  %v2410_v46 = vmul.f32 0.70710677, %v2398_v29  ;;  %v2435_v18 = vadd.f32 1.0, %v753_v4  ;;  %v742_v52 = vmul.f32 %v741_v31, %v2340_v49 }
 0x1b8   : > { %v790_v20 = vadd.f32 0.112945676, %v789_v6  ;;  %v777_v22 = vadd.f32 0.0036580483, %v776_v9  ;;  %v815_v23 = vadd.f32 0.00028619796, %v814_v10  ;;  %v2445_v28 = vpop.eup %1876  ;;  %v2487_v53 = vmul.f32 %v703_v39, %v2325_v40 }
 0x1b9   : > { %v827_v51 = vmul.f32 %v826_v33, %v2379_v14  ;;  %v852_v62 = vmul.f32 %v2410_v46, %v2410_v46  ;;  %1878 = vrcp.f32 %v2435_v18  ;;  %v1365_v33 = vld [vmem:[%s3246_s4 + $0x8] sm:$0xff]  ;;  %v1070_v35 = vadd.f32 0.112945676, %v1069_v21 }
 0x1ba   : > { %v791_v34 = vmul.f32 %v790_v20, %v2373_v8  ;;  %1439 = vmatpush.msra.mxu1 %v1365_v33  ;;  %1764 = vmatpush.msra.mxu2 %v1365_v33  ;;  %v778_v41 = vmul.f32 %v777_v22, %v2373_v8  ;;  %v816_v45 = vmul.f32 %v815_v23, %v2379_v14  ;;  %v2472_v57 = vmul.f32 0.5, %v2328_v42 }
 0x1bb   : > { %v828_v5 = vadd.f32 0.014752088, %v827_v51  ;;  %v2429_v12 = vmin.f32 %v852_v62, 16.0  ;;  %v716_v47 = vmul.f32 %v2445_v28, %v2415_v56  ;;  %v2464_v51 = vmin.f32 %v1092_v27, 16.0 }
 0x1bc   : > { %v627_v36 = vpop.f32.mrf.mxu0  ;;  %1440 = vmatpush.msra.mxu1 %v1364_v43  ;;  %1765 = vmatpush.msra.mxu2 %v1364_v43  ;;  %v792_v62 = vadd.f32 0.4994258, %v791_v34  ;;  %v1071_v1 = vmul.f32 %v1070_v35, %v2382_v16  ;;  %v726_v4 = vand.u32 2147483648, %v2415_v56  ;;  %v2482_v49 = vmul.f32 0.5, %v2351_v58 }
 0x1bd   : > { %v829_v19 = vmul.f32 %v828_v5, %v2379_v14  ;;  %v865_v26 = vmul.f32 3.8918573e-05, %v2429_v12  ;;  %v2469_v55 = vadd.f32 %v2319_v37, %v627_v36  ;;  %v779_v5 = vadd.f32 0.05243302, %v778_v41 }
 0x1be   : > { %v817_v6 = vadd.f32 0.0036580483, %v816_v45  ;;  %v717_v7 = vsub.f32 1.0, %v716_v47  ;;  %v1059_v9 = vadd.f32 0.05243302, %v1058_v48  ;;  %v793_v20 = vmul.f32 %v792_v62, %v2373_v8 }
 0x1bf   : > { %v830_v32 = vadd.f32 0.112945676, %v829_v19  ;;  %v866_v50 = vadd.f32 0.001143296, %v865_v26  ;;  %v2478_v3 = vpop.eup %1878  ;;  %v1105_v10 = vmul.f32 3.8918573e-05, %v2464_v51  ;;  %vm720_vm2 = vweird.f32 %v2415_v56 }
 0x1c0   : > { %v743_v11 = vadd.f32 1.1283791, %v742_v52  ;;  %v2490_v17 = vmul.f32 0.70710677, %v2469_v55  ;;  %v724_v19 = vand.u32 2147483647, %v2415_v56  ;;  %v756_v58 = vmul.f32 %v2478_v3, %v2435_v18 }
 0x1c1   : > { %v831_v54 = vmul.f32 %v830_v32, %v2379_v14  ;;  %v867_v42 = vmul.f32 %v866_v50, %v2429_v12  ;;  %v1072_v21 = vadd.f32 0.4994258, %v1071_v1  ;;  %v727_v22 = vor.u32 1.1754944e-38, %v726_v4 }
 0x1c2   : > { %v780_v23 = vmul.f32 %v779_v5, %v2373_v8  ;;  %v818_v40 = vmul.f32 %v817_v6, %v2379_v14  ;;  %v718_v24 = vmul.f32 %v2445_v28, %v717_v7  ;;  %v1060_v25 = vmul.f32 %v1059_v9, %v2382_v16 }
 0x1c3   : > { %v832_v15 = vadd.f32 0.4994258, %v831_v54  ;;  %v868_v26 = vadd.f32 0.014752088, %v867_v42  ;;  %v1106_v27 = vadd.f32 0.001143296, %v1105_v10  ;;  %vm721_vm3 = vweird.f32 %v2445_v28 }
 0x1c4   : > { %v630_v30 = vpop.f32.mrf.mxu0  ;;  %v2503_v31 = vmul.f32 %v743_v11, %v2333_v44  ;;  %v892_v33 = vmul.f32 %v2490_v17, %v2490_v17  ;;  %vm2508_vm4 = vcmp.eq.f32.partialorder %v724_v19, 8.507059e+37  ;;  %v757_v35 = vsub.f32 1.0, %v756_v58  ;;  %vm2537_vm6 = vmor %vm720_vm2, %vm721_vm3 }
 0x1c5   : > { %v833_v32 = vmul.f32 %v832_v15, %v2379_v14  ;;  %v2512_v36 = vadd.f32 1.0, %v793_v20  ;;  %v1073_v41 = vmul.f32 %v1072_v21, %v2382_v16  ;;  %v854_v45 = vmul.f32 2.1237322e-06, %v2429_v12 }
 0x1c6   : > { %v764_v43 = vand.u32 2147483647, %v2435_v18  ;;  %v781_v44 = vadd.f32 0.18741608, %v780_v23  ;;  %v819_v47 = vadd.f32 0.05243302, %v818_v40  ;;  %v2518_v48 = vadd.f32 %v2319_v37, %v630_v30  ;;  %v645_v30 = vpop.f32.mrf.mxu3 }
 0x1c7   : > { %v719_v50 = vadd.f32 %v2445_v28, %v718_v24  ;;  %v1061_v39 = vadd.f32 0.18741608, %v1060_v25  ;;  %v869_v52 = vmul.f32 %v868_v26, %v2429_v12  ;;  %v1107_v54 = vmul.f32 %v1106_v27, %v2464_v51 }
 0x1c8   : > { %vm760_vm5 = vweird.f32 %v2435_v18  ;;  %v2524_v62 = vadd.f32 1.0, %v833_v32  ;;  %v1094_v1 = vmul.f32 2.1237322e-06, %v2464_v51  ;;  %v2527_v4 = vmin.f32 %v892_v33, 16.0 }
 0x1c9   : > { %v758_v5 = vmul.f32 %v2478_v3, %v757_v35  ;;  %1880 = vrcp.f32 %v2512_v36  ;;  %v2531_v6 = vadd.f32 1.0, %v1073_v41  ;;  %v855_v7 = vadd.f32 0.00028619796, %v854_v45 }
 0x1ca   : > { %v766_v42 = vand.u32 2147483648, %v2435_v18  ;;  %v782_v10 = vmul.f32 %v781_v44, %v2373_v8  ;;  %v820_v11 = vmul.f32 %v819_v47, %v2379_v14  ;;  %v2545_v15 = vmul.f32 0.70710677, %v2518_v48 }
 0x1cb   : > { %v723_v19 = vsel %vm2537_vm6, %v2445_v28, %v719_v50  ;;  %vm2550_vm7 = vcmp.eq.f32.partialorder %v764_v43, 8.507059e+37  ;;  %v1062_v56 = vmul.f32 %v1061_v39, %v2382_v16  ;;  %v870_v20 = vadd.f32 0.112945676, %v869_v52 }
 0x1cc   : > { %v1108_v21 = vadd.f32 0.014752088, %v1107_v54  ;;  %1882 = vrcp.f32 %v2524_v62  ;;  %v1095_v8 = vadd.f32 0.00028619796, %v1094_v1  ;;  %v905_v23 = vmul.f32 3.8918573e-05, %v2527_v4 }
 0x1cd   : > { %v932_v40 = vmul.f32 %v2545_v15, %v2545_v15  ;;  %v759_v24 = vadd.f32 %v2478_v3, %v758_v5  ;;  %vm761_vm8 = vweird.f32 %v2478_v3  ;;  %1884 = vrcp.f32 %v2531_v6 }
 0x1ce   : > { %v856_v28 = vmul.f32 %v855_v7, %v2429_v12  ;;  %v728_v16 = vsel %vm2508_vm4, %v727_v22, %v723_v19  ;;  %v767_v25 = vor.u32 1.1754944e-38, %v766_v42  ;;  %v806_v26 = vand.u32 2147483648, %v2512_v36  ;;  %vm2574_vm9 = vmor %vm760_vm5, %vm761_vm8 }
 0x1cf   : > { %v821_v27 = vadd.f32 0.18741608, %v820_v11  ;;  %v2566_v32 = vpop.eup %1880  ;;  %v783_v33 = vadd.f32 1.1283791, %v782_v10  ;;  %v871_v35 = vmul.f32 %v870_v20, %v2429_v12  ;;  %v1109_v41 = vmul.f32 %v1108_v21, %v2464_v51 }
 0x1d0   : > { %v2570_v45 = vmin.f32 %v932_v40, 16.0  ;;  %v1063_v22 = vadd.f32 1.1283791, %v1062_v56  ;;  %v2579_v34 = vmul.f32 0.5, %v2398_v29  ;;  %v1096_v44 = vmul.f32 %v1095_v8, %v2464_v51 }
 0x1d1   : > { %v906_v47 = vadd.f32 0.001143296, %v905_v23  ;;  %v729_v50 = vmul.f32 %v728_v16, %v2487_v53  ;;  %v763_v39 = vsel %vm2574_vm9, %v2478_v3, %v759_v24  ;;  %v857_v52 = vadd.f32 0.0036580483, %v856_v28 }
 0x1d2   : > { %v2587_v18 = vadd.f32 %v2319_v37, %v645_v30  ;;  %v2589_v54 = vpop.eup %1882  ;;  %v796_v1 = vmul.f32 %v2566_v32, %v2512_v36  ;;  %v804_v29 = vand.u32 2147483647, %v2512_v36  ;;  %v2594_v5 = vor.u32 1.1754944e-38, %v806_v26 }
 0x1d3   : > { %v822_v7 = vmul.f32 %v821_v27, %v2379_v14  ;;  %v2597_v53 = vpop.eup %1884  ;;  %v2600_v9 = vmul.f32 %v783_v33, %v2354_v59  ;;  %v872_v3 = vadd.f32 0.4994258, %v871_v35  ;;  %v1110_v42 = vadd.f32 0.112945676, %v1109_v41 }
 0x1d4   : > { %3285 = vst [vmem:[#allocation17_spill] sm:$0xff] %v2587_v18  ;;  %v945_v10 = vmul.f32 3.8918573e-05, %v2570_v45  ;;  %v768_v11 = vsel %vm2550_vm7, %v767_v25, %v763_v39  ;;  %v2606_v19 = vmul.f32 %v1063_v22, %v2367_v2  ;;  %v1097_v56 = vadd.f32 0.0036580483, %v1096_v44 }
 0x1d5   : > { %v907_v20 = vmul.f32 %v906_v47, %v2527_v4  ;;  %v836_v14 = vmul.f32 %v2589_v54, %v2524_v62  ;;  %v1084_v21 = vand.u32 2147483647, %v2531_v6  ;;  %v858_v59 = vmul.f32 %v857_v52, %v2429_v12 }
 0x1d6   : > { %v2614_v8 = vmul.f32 0.70710677, %v2587_v18  ;;  %v797_v23 = vsub.f32 1.0, %v796_v1  ;;  %v823_v40 = vadd.f32 1.1283791, %v822_v7  ;;  %v1076_v58 = vmul.f32 %v2597_v53, %v2531_v6  ;;  %v633_v7 = vpop.f32.mrf.mxu0 }
 0x1d7   : > { %v1683_v2 = vclamps-f32 %v729_v50, 1.0  ;;  %v873_v24 = vmul.f32 %v872_v3, %v2429_v12  ;;  %v1111_v28 = vmul.f32 %v1110_v42, %v2464_v51  ;;  %v894_v16 = vmul.f32 2.1237322e-06, %v2527_v4 }
 0x1d8   : > { %v946_v25 = vadd.f32 0.001143296, %v945_v10  ;;  %v2622_v26 = vmul.f32 %v768_v11, %v2503_v31  ;;  %vm800_vm10 = vweird.f32 %v2512_v36  ;;  %vm1080_vm11 = vweird.f32 %v2531_v6 }
 0x1d9   : > { %v1086_v27 = vand.u32 2147483648, %v2531_v6  ;;  %v1098_v30 = vmul.f32 %v1097_v56, %v2464_v51  ;;  %v908_v33 = vadd.f32 0.014752088, %v907_v20  ;;  %vm801_vm12 = vweird.f32 %v2566_v32 }
 0x1da   : > { %v837_v35 = vsub.f32 1.0, %v836_v14  ;;  %v859_v41 = vadd.f32 0.05243302, %v858_v59  ;;  %v1132_v43 = vmul.f32 %v2614_v8, %v2614_v8  ;;  %v798_v22 = vmul.f32 %v2566_v32, %v797_v23  ;;  %vm2670_vm2 = vmor %vm800_vm10, %vm801_vm12 }
 0x1db   : > { %v2633_v31 = vmul.f32 %v823_v40, %v2362_v0  ;;  %v1077_v44 = vsub.f32 1.0, %v1076_v58  ;;  %v1332_v47 = vadd.f32 1.0, %v1683_v2  ;;  %vm840_vm13 = vweird.f32 %v2524_v62 }
 0x1dc   : > { %v2636_v50 = vadd.f32 1.0, %v873_v24  ;;  %v1112_v39 = vadd.f32 0.4994258, %v1111_v28  ;;  %v895_v52 = vadd.f32 0.00028619796, %v894_v16  ;;  %v947_v1 = vmul.f32 %v946_v25, %v2570_v45 }
 0x1dd   : > { %vm2639_vm14 = vcmp.eq.f32.partialorder %v804_v29, 8.507059e+37  ;;  %v844_v42 = vand.u32 2147483647, %v2524_v62  ;;  %v846_v0 = vand.u32 2147483648, %v2524_v62  ;;  %v1099_v10 = vadd.f32 0.05243302, %v1098_v30 }
 0x1de   : > { %v909_v11 = vmul.f32 %v908_v33, %v2527_v4  ;;  %v838_v56 = vmul.f32 %v2589_v54, %v837_v35  ;;  %v860_v20 = vmul.f32 %v859_v41, %v2429_v12  ;;  %v2648_v14 = vmin.f32 %v1132_v43, 16.0  ;;  %v648_v35 = vpop.f32.mrf.mxu3 }
 0x1df   : > { %v799_v59 = vadd.f32 %v2566_v32, %v798_v22  ;;  %v1078_v29 = vmul.f32 %v2597_v53, %v1077_v44  ;;  %v1348_v23 = vmul.f32 %v1332_v47, %v2454_v38  ;;  %v2654_v40 = vadd.f32 %v2319_v37, %v633_v7 }
 0x1e0   : > { %1886 = vrcp.f32 %v2636_v50  ;;  %v1113_v58 = vmul.f32 %v1112_v39, %v2464_v51  ;;  %v896_v2 = vmul.f32 %v895_v52, %v2527_v4  ;;  %v948_v24 = vadd.f32 0.014752088, %v947_v1 }
 0x1e1   : > { %vm1081_vm0 = vweird.f32 %v2597_v53  ;;  %vm2660_vm1 = vcmp.eq.f32.partialorder %v1084_v21, 8.507059e+37  ;;  %v1087_v16 = vor.u32 1.1754944e-38, %v1086_v27  ;;  %v1100_v25 = vmul.f32 %v1099_v10, %v2464_v51  ;;  %1699 = vmatmul.msk.f32.vlgmr.msra.gmra.mxu1 %vm1376_vm15, %v1348_v23 }
 0x1e2   : > { %v910_v38 = vadd.f32 0.112945676, %v909_v11  ;;  %v839_v33 = vadd.f32 %v2589_v54, %v838_v56  ;;  %vm841_vm3 = vweird.f32 %v2589_v54  ;;  %v861_v21 = vadd.f32 0.18741608, %v860_v20  ;;  %vm2692_vm5 = vmor %vm1080_vm11, %vm1081_vm0 }
 0x1e3   : > { %v1145_v27 = vmul.f32 3.8918573e-05, %v2648_v14  ;;  %v803_v41 = vsel %vm2670_vm2, %v2566_v32, %v799_v59  ;;  %vm2680_vm4 = vcmp.eq.f32.partialorder %v844_v42, 8.507059e+37  ;;  %v1079_v36 = vadd.f32 %v2597_v53, %v1078_v29  ;;  %vm2702_vm6 = vmor %vm840_vm13, %vm841_vm3 }
 0x1e4   : > { %v2686_v22 = vmul.f32 0.70710677, %v2654_v40  ;;  %v2696_v47 = vadd.f32 1.0, %v1113_v58  ;;  %v897_v32 = vadd.f32 0.0036580483, %v896_v2  ;;  %v949_v52 = vmul.f32 %v948_v24, %v2570_v45 }
 0x1e5   : > { %v1134_v39 = vmul.f32 2.1237322e-06, %v2648_v14  ;;  %v847_v7 = vor.u32 1.1754944e-38, %v846_v0  ;;  %v1101_v42 = vadd.f32 0.18741608, %v1100_v25  ;;  %v911_v6 = vmul.f32 %v910_v38, %v2527_v4 }
 0x1e6   : > { %v972_v10 = vmul.f32 %v2686_v22, %v2686_v22  ;;  %v2709_v11 = vpop.eup %1886  ;;  %v808_v56 = vsel %vm2639_vm14, %v2594_v5, %v803_v41  ;;  %v843_v62 = vsel %vm2702_vm6, %v2589_v54, %v839_v33  ;;  %v862_v20 = vmul.f32 %v861_v21, %v2429_v12  ;;  %v651_v44 = vpop.f32.mrf.mxu3 }
 0x1e7   : > { %v1146_v59 = vadd.f32 0.001143296, %v1145_v27  ;;  %v1083_v0 = vsel %vm2692_vm5, %v2597_v53, %v1079_v36  ;;  %v2722_v29 = vadd.f32 %v2319_v37, %v648_v35  ;;  %v1684_v58 = vclamps-f32 %v2622_v26, 1.0 }
 0x1e8   : > { %v2724_v23 = vmin.f32 %v972_v10, 16.0  ;;  %1888 = vrcp.f32 %v2696_v47  ;;  %v898_v5 = vmul.f32 %v897_v32, %v2527_v4  ;;  %v1135_v3 = vadd.f32 0.00028619796, %v1134_v39 }
 0x1e9   : > { %3298 = vst [vmem:[#allocation18_spill] sm:$0xff] %v2722_v29  ;;  %v950_v54 = vadd.f32 0.112945676, %v949_v52  ;;  %v848_v12 = vsel %vm2680_vm4, %v847_v7, %v843_v62  ;;  %v876_v2 = vmul.f32 %v2709_v11, %v2636_v50  ;;  %v1102_v53 = vmul.f32 %v1101_v42, %v2464_v51 }
 0x1ea   : > { %v912_v24 = vadd.f32 0.4994258, %v911_v6  ;;  %v863_v25 = vadd.f32 1.1283791, %v862_v20  ;;  %v1147_v38 = vmul.f32 %v1146_v59, %v2648_v14  ;;  %v934_v26 = vmul.f32 2.1237322e-06, %v2570_v45 }
 0x1eb   : > { %v985_v30 = vmul.f32 3.8918573e-05, %v2724_v23  ;;  %v2738_v33 = vmul.f32 %v808_v56, %v2600_v9  ;;  %v2741_v21 = vmul.f32 0.5, %v2469_v55  ;;  %v2744_v27 = vmul.f32 0.70710677, %v2722_v29 }
 0x1ec   : > { %v1333_v35 = vadd.f32 1.0, %v1684_v58  ;;  %v2748_v51 = vsel %vm2660_vm1, %v1087_v16, %v1083_v0  ;;  %v899_v41 = vadd.f32 0.05243302, %v898_v5  ;;  %v1136_v43 = vmul.f32 %v1135_v3, %v2648_v14 }
 0x1ed   : > { %v951_v36 = vmul.f32 %v950_v54, %v2570_v45  ;;  %v2753_v9 = vmul.f32 %v848_v12, %v2633_v31  ;;  %v877_v32 = vsub.f32 1.0, %v876_v2  ;;  %v913_v55 = vmul.f32 %v912_v24, %v2527_v4  ;;  %v636_v12 = vpop.f32.mrf.mxu0 }
 0x1ee   : > { %v986_v39 = vadd.f32 0.001143296, %v985_v30  ;;  %v2756_v52 = vpop.eup %1888  ;;  %v2759_v1 = vmul.f32 %v863_v25, %v2410_v46  ;;  %v2761_v28 = vadd.f32 1.1283791, %v1102_v53  ;;  %v1148_v16 = vadd.f32 0.014752088, %v1147_v38 }
 0x1ef   : > { %v935_v7 = vadd.f32 0.00028619796, %v934_v26  ;;  %v1172_v42 = vmul.f32 %v2744_v27, %v2744_v27  ;;  %v2767_v31 = vadd.f32 %v2319_v37, %v651_v44  ;;  %v1349_v10 = vmul.f32 %v1333_v35, %v2472_v57 }
 0x1f0   : > { %v987_v6 = vmul.f32 %v986_v39, %v2724_v23  ;;  %vm880_vm7 = vweird.f32 %v2636_v50  ;;  %v900_v56 = vmul.f32 %v899_v41, %v2527_v4  ;;  %v1137_v46 = vadd.f32 0.0036580483, %v1136_v43 }
 0x1f1   : > { %3299 = vst [vmem:[#allocation19_spill] sm:$0xff] %v2767_v31  ;;  %v952_v62 = vadd.f32 0.4994258, %v951_v36  ;;  %v878_v20 = vmul.f32 %v2709_v11, %v877_v32  ;;  %v1116_v59 = vmul.f32 %v2756_v52, %v2696_v47  ;;  %v2775_v0 = vadd.f32 1.0, %v913_v55  ;;  %1700 = vmatmul.msk.f32.gmra.mxu1 %vm1376_vm15, %v1349_v10 }
 0x1f2   : > { %v988_v58 = vadd.f32 0.014752088, %v987_v6  ;;  %v884_v5 = vand.u32 2147483647, %v2636_v50  ;;  %v886_v57 = vand.u32 2147483648, %v2636_v50  ;;  %v1149_v3 = vmul.f32 %v1148_v16, %v2648_v14 }
 0x1f3   : > { %v936_v54 = vmul.f32 %v935_v7, %v2570_v45  ;;  %v2783_v53 = vmin.f32 %v1172_v42, 16.0  ;;  %v2787_v25 = vmul.f32 0.70710677, %v2767_v31  ;;  %vm881_vm8 = vweird.f32 %v2709_v11  ;;  %v654_v42 = vpop.f32.mrf.mxu3 }
 0x1f4   : > { %v989_v24 = vmul.f32 %v988_v58, %v2724_v23  ;;  %v901_v38 = vadd.f32 0.18741608, %v900_v56  ;;  %v1138_v26 = vmul.f32 %v1137_v46, %v2648_v14  ;;  %v953_v30 = vmul.f32 %v952_v62, %v2570_v45  ;;  %vm2810_vm11 = vmor %vm880_vm7, %vm881_vm8 }
 0x1f5   : > { %3300 = vst [vmem:[#allocation20_spill] sm:$0xff] %v2787_v25  ;;  %v879_v35 = vadd.f32 %v2709_v11, %v878_v20  ;;  %v1117_v41 = vsub.f32 1.0, %v1116_v59  ;;  %1890 = vrcp.f32 %v2775_v0  ;;  %v2795_v43 = vadd.f32 %v2319_v37, %v636_v12 }
 0x1f6   : > { %vm1120_vm9 = vweird.f32 %v2696_v47  ;;  %v1150_v36 = vadd.f32 0.112945676, %v1149_v3  ;;  %v937_v44 = vadd.f32 0.0036580483, %v936_v54  ;;  %v990_v32 = vadd.f32 0.112945676, %v989_v24 }
 0x1f7   : > { %vm2798_vm10 = vcmp.eq.f32.partialorder %v884_v5, 8.507059e+37  ;;  %v1126_v39 = vand.u32 2147483648, %v2696_v47  ;;  %v1185_v16 = vmul.f32 3.8918573e-05, %v2783_v53  ;;  %v1212_v7 = vmul.f32 %v2787_v25, %v2787_v25 }
 0x1f8   : > { %vm1121_vm12 = vweird.f32 %v2756_v52  ;;  %v902_v10 = vmul.f32 %v901_v38, %v2527_v4  ;;  %v2816_v56 = vadd.f32 1.0, %v953_v30  ;;  %v991_v46 = vmul.f32 %v990_v32, %v2724_v23 }
 0x1f9   : > { %v883_v62 = vsel %vm2810_vm11, %v2709_v11, %v879_v35  ;;  %v1118_v20 = vmul.f32 %v2756_v52, %v1117_v41  ;;  %v1139_v59 = vadd.f32 0.05243302, %v1138_v26  ;;  %v2824_v50 = vmul.f32 0.70710677, %v2795_v43  ;;  %vm2854_vm13 = vmor %vm1120_vm9, %vm1121_vm12 }
 0x1fa   : > { %v1151_v58 = vmul.f32 %v1150_v36, %v2648_v14  ;;  %v938_v5 = vmul.f32 %v937_v44, %v2570_v45  ;;  %v992_v3 = vadd.f32 0.4994258, %v991_v46  ;;  %v2829_v4 = vadd.f32 %v2319_v37, %v654_v42 }
 0x1fb   : > { %v2831_v54 = vpop.eup %1890  ;;  %v1186_v12 = vadd.f32 0.001143296, %v1185_v16  ;;  %v974_v24 = vmul.f32 2.1237322e-06, %v2724_v23  ;;  %v2834_v11 = vmin.f32 %v1212_v7, 16.0  ;;  %v1012_v38 = vmul.f32 %v2824_v50, %v2824_v50 }
 0x1fc   : > { %3305 = vst [vmem:[#allocation21_spill] sm:$0xff] %v2829_v4  ;;  %v887_v26 = vor.u32 1.1754944e-38, %v886_v57  ;;  %v2838_v30 = vor.u32 1.1754944e-38, %v1126_v39  ;;  %v903_v35 = vadd.f32 1.1283791, %v902_v10  ;;  %1892 = vrcp.f32 %v2816_v56 }
 0x1fd   : > { %v2842_v41 = vadd.f32 %v2756_v52, %v1118_v20  ;;  %v1140_v36 = vmul.f32 %v1139_v59, %v2648_v14  ;;  %v993_v44 = vmul.f32 %v992_v3, %v2724_v23  ;;  %v2846_v32 = vmin.f32 %v1012_v38, 16.0 }
 0x1fe   : > { %v888_v16 = vsel %vm2798_vm10, %v887_v26, %v883_v62  ;;  %v916_v39 = vmul.f32 %v2831_v54, %v2775_v0  ;;  %v1152_v7 = vadd.f32 0.4994258, %v1151_v58  ;;  %v2861_v42 = vmul.f32 0.70710677, %v2829_v4 }
 0x1ff   : > { %v939_v6 = vadd.f32 0.05243302, %v938_v5  ;;  %v1187_v10 = vmul.f32 %v1186_v12, %v2783_v53  ;;  %v975_v55 = vadd.f32 0.00028619796, %v974_v24  ;;  %v1225_v46 = vmul.f32 3.8918573e-05, %v2834_v11 }
 0x200   : > { %3308 = vst [vmem:[#allocation22_spill] sm:$0xff] %v2861_v42  ;;  %v2866_v62 = vmul.f32 %v903_v35, %v2490_v17  ;;  %v2868_v20 = vadd.f32 1.0, %v993_v44  ;;  %v1014_v59 = vmul.f32 2.1237322e-06, %v2846_v32  ;;  %v1025_v3 = vmul.f32 3.8918573e-05, %v2846_v32 }
 0x201   : > { %v2873_v58 = vmul.f32 %v888_v16, %v2759_v1  ;;  %v1141_v12 = vadd.f32 0.18741608, %v1140_v36  ;;  %v1174_v24 = vmul.f32 2.1237322e-06, %v2783_v53  ;;  %v917_v17 = vsub.f32 1.0, %v916_v39  ;;  %v657_v39 = vpop.f32.mrf.mxu3 }
 0x202   : > { %v2880_v38 = vpop.eup %1892  ;;  %v1015_v26 = vadd.f32 0.00028619796, %v1014_v59  ;;  %v1252_v35 = vmul.f32 %v2861_v42, %v2861_v42  ;;  %v1685_v44 = vclamps-f32 %v2738_v33, 1.0  ;;  %v940_v1 = vmul.f32 %v939_v6, %v2570_v45 }
 0x203   : > { %v1188_v16 = vadd.f32 0.014752088, %v1187_v10  ;;  %v976_v2 = vmul.f32 %v975_v55, %v2724_v23  ;;  %v1026_v4 = vadd.f32 0.001143296, %v1025_v3  ;;  %v924_v5 = vand.u32 2147483647, %v2775_v0 }
 0x204   : > { %v1153_v36 = vmul.f32 %v1152_v7, %v2648_v14  ;;  %1894 = vrcp.f32 %v2868_v20  ;;  %v1226_v31 = vadd.f32 0.001143296, %v1225_v46  ;;  %vm920_vm14 = vweird.f32 %v2775_v0 }
 0x205   : > { %v956_v59 = vmul.f32 %v2880_v38, %v2816_v56  ;;  %v1175_v33 = vadd.f32 0.00028619796, %v1174_v24  ;;  %v1016_v6 = vmul.f32 %v1015_v26, %v2846_v32  ;;  %v1027_v10 = vmul.f32 %v1026_v4, %v2846_v32 }
 0x206   : > { %v918_v55 = vmul.f32 %v2831_v54, %v917_v17  ;;  %v926_v3 = vand.u32 2147483648, %v2775_v0  ;;  %v2897_v42 = vmin.f32 %v1252_v35, 16.0  ;;  %v1334_v7 = vadd.f32 1.0, %v1685_v44 }
 0x207   : > { %v941_v29 = vadd.f32 0.18741608, %v940_v1  ;;  %v1189_v46 = vmul.f32 %v1188_v16, %v2783_v53  ;;  %v977_v25 = vadd.f32 0.0036580483, %v976_v2  ;;  %v2901_v18 = vadd.f32 %v2319_v37, %v657_v39 }
 0x208   : > { %vm921_vm0 = vweird.f32 %v2831_v54  ;;  %v2905_v24 = vmul.f32 %v1141_v12, %v2648_v14  ;;  %v1227_v4 = vmul.f32 %v1226_v31, %v2834_v11  ;;  %v1028_v17 = vadd.f32 0.014752088, %v1027_v10 }
 0x209   : > { %3309 = vst [vmem:[#allocation23_spill] sm:$0xff] %v2901_v18  ;;  %vm2908_vm1 = vcmp.eq.f32.partialorder %v924_v5, 8.507059e+37  ;;  %v2912_v35 = vadd.f32 1.0, %v1153_v36  ;;  %v957_v44 = vsub.f32 1.0, %v956_v59  ;;  %v1176_v2 = vmul.f32 %v1175_v33, %v2783_v53  ;;  %vm2937_vm2 = vmor %vm920_vm14, %vm921_vm0 }
 0x20a   : > { %v1017_v1 = vadd.f32 0.0036580483, %v1016_v6  ;;  %v2915_v37 = vpop.eup %1894  ;;  %v919_v16 = vadd.f32 %v2831_v54, %v918_v55  ;;  %v1029_v14 = vmul.f32 %v1028_v17, %v2846_v32  ;;  %v1265_v12 = vmul.f32 3.8918573e-05, %v2897_v42 }
 0x20b   : > { %v1350_v31 = vmul.f32 %v1334_v7, %v2475_v61  ;;  %v942_v5 = vmul.f32 %v941_v29, %v2570_v45  ;;  %v1190_v39 = vadd.f32 0.112945676, %v1189_v46  ;;  %v978_v36 = vmul.f32 %v977_v25, %v2724_v23 }
 0x20c   : > { %v2924_v59 = vmul.f32 0.70710677, %v2901_v18  ;;  %v927_v33 = vor.u32 1.1754944e-38, %v926_v3  ;;  %v1228_v6 = vadd.f32 0.014752088, %v1227_v4  ;;  %v1686_v55 = vclamps-f32 %v2753_v9, 1.0 }
 0x20d   : > { %v1030_v10 = vadd.f32 0.112945676, %v1029_v14  ;;  %1701 = vmatmul.msk.f32.gmra.mxu1 %vm1376_vm15, %v1350_v31  ;;  %1896 = vrcp.f32 %v2912_v35  ;;  %v958_v17 = vmul.f32 %v2880_v38, %v957_v44  ;;  %v996_v61 = vmul.f32 %v2915_v37, %v2868_v20 }
 0x20e   : > { %v1018_v45 = vmul.f32 %v1017_v1, %v2846_v32  ;;  %v1177_v25 = vadd.f32 0.0036580483, %v1176_v2  ;;  %v1266_v3 = vadd.f32 0.001143296, %v1265_v12  ;;  %v1292_v7 = vmul.f32 %v2924_v59, %v2924_v59 }
 0x20f   : > { %v1031_v9 = vmul.f32 %v1030_v10, %v2846_v32  ;;  %v923_v46 = vsel %vm2937_vm2, %v2831_v54, %v919_v16  ;;  %v943_v4 = vadd.f32 1.1283791, %v942_v5  ;;  %v1191_v44 = vmul.f32 %v1190_v39, %v2783_v53 }
 0x210   : > { %v979_v1 = vadd.f32 0.05243302, %v978_v36  ;;  %v1229_v0 = vmul.f32 %v1228_v6, %v2834_v11  ;;  %v2949_v31 = vmin.f32 %v1292_v7, 16.0  ;;  %v1335_v2 = vadd.f32 1.0, %v1686_v55 }
 0x211   : > { %v1032_v14 = vadd.f32 0.4994258, %v1031_v9  ;;  %v959_v10 = vadd.f32 %v2880_v38, %v958_v17  ;;  %vm961_vm3 = vweird.f32 %v2880_v38  ;;  %v997_v12 = vsub.f32 1.0, %v996_v61 }
 0x212   : > { %v1019_v18 = vadd.f32 0.05243302, %v1018_v45  ;;  %v928_v29 = vsel %vm2908_vm1, %v927_v33, %v923_v46  ;;  %v966_v54 = vand.u32 2147483648, %v2816_v56  ;;  %v1267_v5 = vmul.f32 %v1266_v3, %v2897_v42 }
 0x213   : > { %v1033_v16 = vmul.f32 %v1032_v14, %v2846_v32  ;;  %v2958_v39 = vpop.eup %1896  ;;  %vm960_vm4 = vweird.f32 %v2816_v56  ;;  %v964_v36 = vand.u32 2147483647, %v2816_v56  ;;  %v980_v6 = vmul.f32 %v979_v1, %v2724_v23 }
 0x214   : > { %v1305_v55 = vmul.f32 3.8918573e-05, %v2949_v31  ;;  %vm2964_vm5 = vmor %vm960_vm4, %vm961_vm3  ;;  %v1192_v26 = vadd.f32 0.4994258, %v1191_v44  ;;  %v1230_v33 = vadd.f32 0.112945676, %v1229_v0  ;;  %v1351_v45 = vmul.f32 %v1335_v2, %v2482_v49 }
 0x215   : > { %v2968_v61 = vadd.f32 1.0, %v1033_v16  ;;  %v929_v9 = vmul.f32 %v928_v29, %v2866_v62  ;;  %v963_v56 = vsel %vm2964_vm5, %v2880_v38, %v959_v10  ;;  %v998_v3 = vmul.f32 %v2915_v37, %v997_v12 }
 0x216   : > { %v1020_v7 = vmul.f32 %v1019_v18, %v2846_v32  ;;  %v967_v46 = vor.u32 1.1754944e-38, %v966_v54  ;;  %v1268_v1 = vadd.f32 0.014752088, %v1267_v5  ;;  %v1306_v44 = vadd.f32 0.001143296, %v1305_v55  ;;  %1702 = vmatmul.msk.f32.gmra.mxu1 %vm1376_vm15, %v1351_v45 }
 0x217   : > { %1898 = vrcp.f32 %v2968_v61  ;;  %v944_v0 = vmul.f32 %v943_v4, %v2545_v15  ;;  %vm965_vm6 = vcmp.eq.f32.partialorder %v964_v36, 8.507059e+37  ;;  %v1178_v49 = vmul.f32 %v1177_v25, %v2783_v53 }
 0x218   : > { %v981_v62 = vadd.f32 0.18741608, %v980_v6  ;;  %v968_v14 = vsel %vm965_vm6, %v967_v46, %v963_v56  ;;  %v1193_v38 = vmul.f32 %v1192_v26, %v2783_v53  ;;  %v1231_v2 = vmul.f32 %v1230_v33, %v2834_v11 }
 0x219   : > { %v1687_v18 = vclamps-f32 %v2873_v58, 1.0  ;;  %v999_v10 = vadd.f32 %v2915_v37, %v998_v3  ;;  %vm1001_vm7 = vweird.f32 %v2915_v37  ;;  %v1006_v12 = vand.u32 2147483648, %v2868_v20 }
 0x21a   : > { %v1021_v29 = vadd.f32 0.18741608, %v1020_v7  ;;  %v1269_v15 = vmul.f32 %v1268_v1, %v2897_v42  ;;  %v1307_v4 = vmul.f32 %v1306_v44, %v2949_v31  ;;  %v1688_v54 = vclamps-f32 %v929_v9, 1.0 }
 0x21b   : > { %v1336_v25 = vadd.f32 1.0, %v1687_v18  ;;  %v982_v16 = vmul.f32 %v981_v62, %v2724_v23  ;;  %vm1000_vm8 = vweird.f32 %v2868_v20  ;;  %v1004_v5 = vand.u32 2147483647, %v2868_v20 }
 0x21c   : > { %v1214_v58 = vmul.f32 2.1237322e-06, %v2834_v11  ;;  %v1179_v6 = vadd.f32 0.05243302, %v1178_v49  ;;  %v2993_v55 = vadd.f32 1.0, %v1193_v38  ;;  %vm2995_vm9 = vmor %vm1000_vm8, %vm1001_vm7  ;;  %v969_v20 = vmul.f32 %v968_v14, %v944_v0 }
 0x21d   : > { %v1899_v36 = vpop.eup %1898  ;;  %v1232_v26 = vadd.f32 0.4994258, %v1231_v2  ;;  %v1352_v33 = vmul.f32 %v1336_v25, %v2579_v34  ;;  %v3318_v45 = vand.u32 2147483647, %v2696_v47  ;;  %v1003_v9 = vsel %vm2995_vm9, %v2915_v37, %v999_v10 }
 0x21e   : > { %v1022_v56 = vmul.f32 %v1021_v29, %v2846_v32  ;;  %v1036_v3 = vmul.f32 %v1899_v36, %v2968_v61  ;;  %v1007_v7 = vor.u32 1.1754944e-38, %v1006_v12  ;;  %v1270_v46 = vadd.f32 0.112945676, %v1269_v15 }
 0x21f   : > { %vm3002_vm10 = vcmp.eq.f32.partialorder %v3318_v45, 8.507059e+37  ;;  %v1308_v1 = vadd.f32 0.014752088, %v1307_v4  ;;  %1703 = vmatmul.msk.f32.gmra.mxu1 %vm1376_vm15, %v1352_v33  ;;  %v1337_v34 = vadd.f32 1.0, %v1688_v54  ;;  %v983_v47 = vadd.f32 1.1283791, %v982_v16 }
 0x220   : > { %vm1005_vm11 = vcmp.eq.f32.partialorder %v1004_v5, 8.507059e+37  ;;  %v1215_v44 = vadd.f32 0.00028619796, %v1214_v58  ;;  %v1037_v49 = vsub.f32 1.0, %v1036_v3  ;;  %1900 = vrcp.f32 %v2993_v55 }
 0x221   : > { %v1008_v0 = vsel %vm1005_vm11, %v1007_v7, %v1003_v9  ;;  %v1233_v62 = vmul.f32 %v1232_v26, %v2834_v11  ;;  %v1046_v37 = vand.u32 2147483648, %v2968_v61  ;;  %v1023_v32 = vadd.f32 1.1283791, %v1022_v56 }
 0x222   : > { %v1038_v14 = vmul.f32 %v1899_v36, %v1037_v49  ;;  %vm1041_vm12 = vweird.f32 %v1899_v36  ;;  %v1044_v38 = vand.u32 2147483647, %v2968_v61  ;;  %v1271_v2 = vmul.f32 %v1270_v46, %v2897_v42 }
 0x223   : > { %v1309_v18 = vmul.f32 %v1308_v1, %v2949_v31  ;;  %v1353_v10 = vmul.f32 %v1337_v34, %v2741_v21  ;;  %v1689_v12 = vclamps-f32 %v969_v20, 1.0  ;;  %v1156_v29 = vmul.f32 %v2958_v39, %v2912_v35 }
 0x224   : > { %v984_v15 = vmul.f32 %v983_v47, %v2686_v22  ;;  %v1039_v4 = vadd.f32 %v1899_v36, %v1038_v14  ;;  %vm1040_vm14 = vweird.f32 %v2968_v61  ;;  %v1216_v25 = vmul.f32 %v1215_v44, %v2834_v11 }
 0x225   : > { %v3024_v54 = vadd.f32 1.0, %v1233_v62  ;;  %vm1042_vm0 = vmor %vm1040_vm14, %vm1041_vm12  ;;  %v1047_v16 = vor.u32 1.1754944e-38, %v1046_v37  ;;  %v1254_v5 = vmul.f32 2.1237322e-06, %v2897_v42  ;;  %v1024_v21 = vmul.f32 %v1023_v32, %v2824_v50 }
 0x226   : > { %v1009_v58 = vmul.f32 %v1008_v0, %v984_v15  ;;  %v1043_v17 = vsel %vm1042_vm0, %v1899_v36, %v1039_v4  ;;  %vm1045_vm1 = vcmp.eq.f32.partialorder %v1044_v38, 8.507059e+37  ;;  %v3028_v26 = vpop.eup %1900  ;;  %v1272_v22 = vadd.f32 0.4994258, %v1271_v2 }
 0x227   : > { %v1048_v33 = vsel %vm1045_vm1, %v1047_v16, %v1043_v17  ;;  %v1310_v45 = vadd.f32 0.112945676, %v1309_v18  ;;  %1704 = vmatmul.msk.f32.gmra.mxu1 %vm1376_vm15, %v1353_v10  ;;  %v1338_v61 = vadd.f32 1.0, %v1689_v12  ;;  %v1089_v20 = vmul.f32 %v2748_v51, %v2606_v19 }
 0x228   : > { %v1104_v9 = vmul.f32 %v2761_v28, %v2432_v13  ;;  %v1157_v56 = vsub.f32 1.0, %v1156_v29  ;;  %v1049_v3 = vmul.f32 %v1048_v33, %v1024_v21  ;;  %v3321_v50 = vsel %vm2854_vm13, %v2756_v52, %v2842_v41 }
 0x229   : > { %v1128_v36 = vsel %vm3002_vm10, %v2838_v30, %v3321_v50  ;;  %v666_v7 = vmul.f32 0.5, %v2518_v48  ;;  %v1217_v46 = vadd.f32 0.0036580483, %v1216_v25  ;;  %v1255_v1 = vadd.f32 0.00028619796, %v1254_v5 }
 0x22a   : > { %v1143_v19 = vadd.f32 1.1283791, %v2905_v24  ;;  %v1180_v51 = vmul.f32 %v1179_v6, %v2783_v53  ;;  %1902 = vrcp.f32 %v3024_v54  ;;  %v1691_v13 = vclamps-f32 %v1049_v3, 1.0 }
 0x22b   : > { %v1273_v28 = vmul.f32 %v1272_v22, %v2897_v42  ;;  %v1311_v57 = vmul.f32 %v1310_v45, %v2949_v31  ;;  %v1354_v52 = vmul.f32 %v1338_v61, %v666_v7  ;;  %v1690_v41 = vclamps-f32 %v1009_v58, 1.0 }
 0x22c   : > { %v1158_v23 = vmul.f32 %v2958_v39, %v1157_v56  ;;  %v1196_v48 = vmul.f32 %v3028_v26, %v2993_v55  ;;  %v668_v30 = vmul.f32 0.5, %v2795_v43  ;;  %v1340_v34 = vadd.f32 1.0, %v1691_v13 }
 0x22d   : > { %vm1160_vm13 = vweird.f32 %v2912_v35  ;;  %v1218_v24 = vmul.f32 %v1217_v46, %v2834_v11  ;;  %v1256_v6 = vmul.f32 %v1255_v1, %v2897_v42  ;;  %v1294_v47 = vmul.f32 2.1237322e-06, %v2949_v31 }
 0x22e   : > { %vm1161_vm2 = vweird.f32 %v2958_v39  ;;  %v1164_v44 = vand.u32 2147483647, %v2912_v35  ;;  %v1356_v49 = vmul.f32 %v1340_v34, %v668_v30  ;;  %v1692_v0 = vclamps-f32 %v1089_v20, 1.0 }
 0x22f   : > { %v1166_v62 = vand.u32 2147483648, %v2912_v35  ;;  %v3060_v37 = vadd.f32 1.0, %v1273_v28  ;;  %v1312_v43 = vadd.f32 0.4994258, %v1311_v57  ;;  %1705 = vmatmul.msk.f32.gmra.mxu1 %vm1376_vm15, %v1354_v52  ;;  %v1339_v32 = vadd.f32 1.0, %v1690_v41  ;;  %vm3072_vm3 = vmor %vm1160_vm13, %vm1161_vm2 }
 0x230   : > { %v3063_v14 = vpop.eup %1902  ;;  %v1159_v38 = vadd.f32 %v2958_v39, %v1158_v23  ;;  %v1181_v2 = vadd.f32 0.18741608, %v1180_v51  ;;  %v1197_v18 = vsub.f32 1.0, %v1196_v48  ;;  %v667_v10 = vmul.f32 0.5, %v2654_v40  ;;  %1707 = vmatmul.msk.f32.vlgmr.msra.gmra.mxu2 %vm1376_vm15, %v1356_v49 }
 0x231   : > { %v1219_v29 = vadd.f32 0.05243302, %v1218_v24  ;;  %v1257_v15 = vadd.f32 0.0036580483, %v1256_v6  ;;  %v1295_v4 = vadd.f32 0.00028619796, %v1294_v47  ;;  %v1129_v16 = vmul.f32 %v1128_v36, %v1104_v9 }
 0x232   : > { %v669_v25 = vmul.f32 0.5, %v2357_v60  ;;  %vm3077_vm4 = vcmp.eq.f32.partialorder %v1164_v44, 8.507059e+37  ;;  %v1341_v40 = vadd.f32 1.0, %v1692_v0  ;;  %v1167_v58 = vor.u32 1.1754944e-38, %v1166_v62 }
 0x233   : > { %1904 = vrcp.f32 %v3060_v37  ;;  %v1313_v35 = vmul.f32 %v1312_v43, %v2949_v31  ;;  %v1355_v21 = vmul.f32 %v1339_v32, %v667_v10  ;;  %v1163_v17 = vsel %vm3072_vm3, %v2958_v39, %v1159_v38 }
 0x234   : > { %v1182_v33 = vmul.f32 %v1181_v2, %v2783_v53  ;;  %v1198_v60 = vmul.f32 %v3028_v26, %v1197_v18  ;;  %v1236_v22 = vmul.f32 %v3063_v14, %v3024_v54  ;;  %v1144_v45 = vmul.f32 %v1143_v19, %v2614_v8  ;;  %v3330_v18 = vld [vmem:[#allocation17_spill] sm:$0xff] }
 0x235   : > { %v1220_v61 = vmul.f32 %v1219_v29, %v2834_v11  ;;  %v1258_v20 = vmul.f32 %v1257_v15, %v2897_v42  ;;  %v1296_v9 = vmul.f32 %v1295_v4, %v2949_v31  ;;  %vm1200_vm5 = vweird.f32 %v2993_v55 }
 0x236   : > { %vm1201_vm6 = vweird.f32 %v3028_v26  ;;  %v1357_v39 = vmul.f32 %v1341_v40, %v669_v25  ;;  %v1693_v56 = vclamps-f32 %v1129_v16, 1.0  ;;  %v1168_v53 = vsel %vm3077_vm4, %v1167_v58, %v1163_v17  ;;  %v3331_v16 = vld [vmem:[#allocation20_spill] sm:$0xff] }
 0x237   : > { %v1206_v3 = vand.u32 2147483648, %v2993_v55  ;;  %v3099_v50 = vadd.f32 1.0, %v1313_v35  ;;  %1706 = vmatmul.msk.f32.gmra.mxu1 %vm1376_vm15, %v1355_v21  ;;  %v1183_v8 = vadd.f32 1.1283791, %v1182_v33  ;;  %v1199_v36 = vadd.f32 %v3028_v26, %v1198_v60  ;;  %vm3107_vm7 = vmor %vm1200_vm5, %vm1201_vm6 }
 0x238   : > { %v1204_v7 = vand.u32 2147483647, %v2993_v55  ;;  %v1237_v46 = vsub.f32 1.0, %v1236_v22  ;;  %1708 = vmatmul.msk.f32.gmra.mxu2 %vm1376_vm15, %v1357_v39  ;;  %v1221_v51 = vadd.f32 0.18741608, %v1220_v61  ;;  %v670_v57 = vmul.f32 0.5, %v2420_v63 }
 0x239   : > { %v3105_v1 = vpop.eup %1904  ;;  %v1259_v13 = vadd.f32 0.05243302, %v1258_v20  ;;  %v1297_v28 = vadd.f32 0.0036580483, %v1296_v9  ;;  %v1169_v52 = vmul.f32 %v1168_v53, %v1144_v45  ;;  %v1342_v41 = vadd.f32 1.0, %v1693_v56  ;;  %v3334_v20 = vld [vmem:[#allocation18_spill] sm:$0xff] }
 0x23a   : > { %v1207_v23 = vor.u32 1.1754944e-38, %v1206_v3  ;;  %1906 = vrcp.f32 %v3099_v50  ;;  %v1203_v55 = vsel %vm3107_vm7, %v3028_v26, %v1199_v36  ;;  %vm1205_vm8 = vcmp.eq.f32.partialorder %v1204_v7, 8.507059e+37 }
 0x23b   : > { %v1238_v48 = vmul.f32 %v3063_v14, %v1237_v46  ;;  %v1276_v30 = vmul.f32 %v3105_v1, %v3060_v37  ;;  %v1184_v34 = vmul.f32 %v1183_v8, %v2744_v27  ;;  %v1222_v24 = vmul.f32 %v1221_v51, %v2834_v11  ;;  %v3335_v8 = vld [vmem:[#allocation22_spill] sm:$0xff] }
 0x23c   : > { %v1260_v63 = vmul.f32 %v1259_v13, %v2897_v42  ;;  %v1298_v6 = vmul.f32 %v1297_v28, %v2949_v31  ;;  %vm1240_vm9 = vweird.f32 %v3024_v54  ;;  %vm1241_vm10 = vweird.f32 %v3063_v14 }
 0x23d   : > { %v1358_v47 = vmul.f32 %v1342_v41, %v670_v57  ;;  %v1694_v26 = vclamps-f32 %v1169_v52, 1.0  ;;  %v1208_v44 = vsel %vm1205_vm8, %v1207_v23, %v1203_v55  ;;  %v1246_v49 = vand.u32 2147483648, %v3024_v54  ;;  %vm3129_vm11 = vmor %vm1240_vm9, %vm1241_vm10 }
 0x23e   : > { %v1239_v0 = vadd.f32 %v3063_v14, %v1238_v48  ;;  %v1244_v62 = vand.u32 2147483647, %v3024_v54  ;;  %v1277_v27 = vsub.f32 1.0, %v1276_v30  ;;  %v1223_v43 = vadd.f32 1.1283791, %v1222_v24 }
 0x23f   : > { %v1261_v38 = vadd.f32 0.18741608, %v1260_v63  ;;  %v1299_v2 = vadd.f32 0.05243302, %v1298_v6  ;;  %v671_v10 = vmul.f32 0.5, %v3330_v18  ;;  %v1209_v12 = vmul.f32 %v1208_v44, %v1184_v34 }
 0x240   : > { %1709 = vmatmul.msk.f32.gmra.mxu2 %vm1376_vm15, %v1358_v47  ;;  %v1907_v11 = vpop.eup %1906  ;;  %v1343_v29 = vadd.f32 1.0, %v1694_v26  ;;  %v1247_v15 = vor.u32 1.1754944e-38, %v1246_v49  ;;  %v1243_v54 = vsel %vm3129_vm11, %v3063_v14, %v1239_v0  ;;  %vm1245_vm12 = vcmp.eq.f32.partialorder %v1244_v62, 8.507059e+37  ;;  %v1875_v44 = vld [vmem:[%s3247_s5] ss:$0 sm:$0xff] }
 0x241   : > { %v1278_v4 = vmul.f32 %v3105_v1, %v1277_v27  ;;  %v1316_v25 = vmul.f32 %v1907_v11, %v3099_v50  ;;  %v1224_v5 = vmul.f32 %v1223_v43, %v3331_v16  ;;  %v1262_v40 = vmul.f32 %v1261_v38, %v2897_v42  ;;  %v3338_v27 = vld [vmem:[#allocation23_spill] sm:$0xff] }
 0x242   : > { %v1300_v58 = vmul.f32 %v1299_v2, %v2949_v31  ;;  %vm1280_vm14 = vweird.f32 %v3060_v37  ;;  %vm1281_vm0 = vweird.f32 %v3105_v1  ;;  %v1359_v35 = vmul.f32 %v1343_v29, %v671_v10 }
 0x243   : > { %v1695_v21 = vclamps-f32 %v1209_v12, 1.0  ;;  %v1248_v17 = vsel %vm1245_vm12, %v1247_v15, %v1243_v54  ;;  %v1286_v14 = vand.u32 2147483648, %v3060_v37  ;;  %v1279_v33 = vadd.f32 %v3105_v1, %v1278_v4  ;;  %vm3148_vm1 = vmor %vm1280_vm14, %vm1281_vm0 }
 0x244   : > { %v1284_v60 = vand.u32 2147483647, %v3060_v37  ;;  %v1317_v22 = vsub.f32 1.0, %v1316_v25  ;;  %v1263_v45 = vadd.f32 1.1283791, %v1262_v40  ;;  %v672_v9 = vmul.f32 0.5, %v3334_v20 }
 0x245   : > { %v1301_v61 = vadd.f32 0.18741608, %v1300_v58  ;;  %v1249_v39 = vmul.f32 %v1248_v17, %v1224_v5  ;;  %v1344_v56 = vadd.f32 1.0, %v1695_v21  ;;  %v1287_v53 = vor.u32 1.1754944e-38, %v1286_v14 }
 0x246   : > { %v1283_v3 = vsel %vm3148_vm1, %v3105_v1, %v1279_v33  ;;  %vm1285_vm13 = vcmp.eq.f32.partialorder %v1284_v60, 8.507059e+37  ;;  %v1318_v37 = vmul.f32 %v1907_v11, %v1317_v22  ;;  %v1264_v36 = vmul.f32 %v1263_v45, %v3335_v8  ;;  %v3336_v1 = vld [vmem:[#allocation19_spill] sm:$0xff] }
 0x247   : > { %v1302_v7 = vmul.f32 %v1301_v61, %v2949_v31  ;;  %vm1320_vm2 = vweird.f32 %v3099_v50  ;;  %vm1321_vm3 = vweird.f32 %v1907_v11  ;;  %v1360_v46 = vmul.f32 %v1344_v56, %v672_v9 }
 0x248   : > { %1710 = vmatmul.msk.f32.gmra.mxu2 %vm1376_vm15, %v1359_v35  ;;  %v1696_v19 = vclamps-f32 %v1249_v39, 1.0  ;;  %v1288_v51 = vsel %vm1285_vm13, %v1287_v53, %v1283_v3  ;;  %v1326_v13 = vand.u32 2147483648, %v3099_v50  ;;  %v1319_v28 = vadd.f32 %v1907_v11, %v1318_v37  ;;  %vm1322_vm4 = vmor %vm1320_vm2, %vm1321_vm3 }
 0x249   : > { %v1324_v57 = vand.u32 2147483647, %v3099_v50  ;;  %v673_v52 = vmul.f32 0.5, %v3336_v1  ;;  %v1289_v41 = vmul.f32 %v1288_v51, %v1264_v36  ;;  %v1303_v23 = vadd.f32 1.1283791, %v1302_v7  ;;  %v3337_v50 = vld [vmem:[#allocation21_spill] sm:$0xff] }
 0x24a   : > { %v1345_v55 = vadd.f32 1.0, %v1696_v19  ;;  %v1327_v31 = vor.u32 1.1754944e-38, %v1326_v13  ;;  %v1323_v48 = vsel %vm1322_vm4, %v1907_v11, %v1319_v28  ;;  %v674_v6 = vmul.f32 0.5, %v3337_v50 }
 0x24b   : > { %vm1325_vm5 = vcmp.eq.f32.partialorder %v1324_v57, 8.507059e+37  ;;  %v1304_v30 = vmul.f32 %v1303_v23, %v2924_v59  ;;  %v1697_v24 = vclamps-f32 %v1289_v41, 1.0  ;;  %v675_v11 = vmul.f32 0.5, %v3338_v27 }
 0x24c   : > { %v1361_v34 = vmul.f32 %v1345_v55, %v673_v52  ;;  %v1328_v63 = vsel %vm1325_vm5, %v1327_v31, %v1323_v48 }
 0x24d   : > { %v1329_v47 = vmul.f32 %v1328_v63, %v1304_v30  ;;  %v1346_v26 = vadd.f32 1.0, %v1697_v24 }
 0x24f   : > { %v1362_v49 = vmul.f32 %v1346_v26, %v674_v6  ;;  %v1698_v0 = vclamps-f32 %v1329_v47, 1.0 }
 0x250   : > { %1711 = vmatmul.msk.f32.gmra.mxu2 %vm1376_vm15, %v1360_v46 }
 0x251   : > { %v1347_v43 = vadd.f32 1.0, %v1698_v0 }
 0x253   : > { %v1363_v32 = vmul.f32 %v1347_v43, %v675_v11 }
 0x258   : > { %1712 = vmatmul.msk.f32.gmra.mxu2 %vm1376_vm15, %v1361_v34 }
 0x25e   : > { %v1442_v62 = vpop.f32.mrf.mxu1 }
 0x25f   : > { %v1443_v59 = vadd.f32 %v1875_v44, %v1442_v62 }
 0x260   : > { %1713 = vmatmul.msk.f32.gmra.mxu2 %vm1376_vm15, %v1362_v49 }
 0x261   : > { %1490 = vst [vmem:[%s2228_s24] sm:$0xff] %v1443_v59 }
 0x268   : > { %1714 = vmatmul.msk.f32.gmra.mxu2 %vm1376_vm15, %v1363_v32 }
 0x26e   : > { %v1445_v38 = vpop.f32.mrf.mxu1 }
 0x26f   : > { %v1446_v2 = vadd.f32 %v1875_v44, %v1445_v38 }
 0x271   : > { %1491 = vst [vmem:[%s2228_s24 + $0x8] sm:$0xff] %v1446_v2 }
 0x28a   : > { %v1448_v18 = vpop.f32.mrf.mxu1 }
 0x28b   : > { %v1449_v10 = vadd.f32 %v1875_v44, %v1448_v18 }
 0x28d   : > { %1492 = vst [vmem:[%s2228_s24 + $0x10] sm:$0xff] %v1449_v10 }
 0x293   : > { %v1451_v12 = vpop.f32.mrf.mxu1 }
 0x294   : > { %v1452_v29 = vadd.f32 %v1875_v44, %v1451_v12 }
 0x296   : > { %1493 = vst [vmem:[%s2228_s24 + $0x18] sm:$0xff] %v1452_v29 }
 0x29c   : > { %v1454_v15 = vpop.f32.mrf.mxu1 }
 0x29d   : > { %v1455_v54 = vadd.f32 %v1875_v44, %v1454_v15 }
 0x29f   : > { %1494 = vst [vmem:[%s2228_s24 + $0x20] sm:$0xff] %v1455_v54 }
 0x2a4   : > { %v1457_v4 = vpop.f32.mrf.mxu1 }
 0x2a5   : > { %v1458_v25 = vadd.f32 %v1875_v44, %v1457_v4 }
 0x2a7   : > { %1495 = vst [vmem:[%s2228_s24 + $0x28] sm:$0xff] %v1458_v25 }
 0x2ac   : > { %v1460_v16 = vpop.f32.mrf.mxu1 }
 0x2ad   : > { %v1461_v5 = vadd.f32 %v1875_v44, %v1460_v16 }
 0x2af   : > { %1496 = vst [vmem:[%s2228_s24 + $0x30] sm:$0xff] %v1461_v5 }
 0x2b3   : > { %v1466_v40 = vpop.f32.mrf.mxu2 }
 0x2b4   : > { %v1463_v58 = vpop.f32.mrf.mxu1  ;;  %v1467_v35 = vadd.f32 %v1875_v44, %v1466_v40 }
 0x2b5   : > { %v1464_v21 = vadd.f32 %v1875_v44, %v1463_v58 }
 0x2b6   : > { %1498 = vst [vmem:[%s2228_s24 + $0x40] sm:$0xff] %v1467_v35 }
 0x2b7   : > { %1497 = vst [vmem:[%s2228_s24 + $0x38] sm:$0xff] %v1464_v21 }
 0x2bb   : > { %v1469_v17 = vpop.f32.mrf.mxu2 }
 0x2bc   : > { %v1470_v14 = vadd.f32 %v1875_v44, %v1469_v17 }
 0x2be   : > { %1499 = vst [vmem:[%s2228_s24 + $0x48] sm:$0xff] %v1470_v14 }
 0x2c3   : > { %v1472_v33 = vpop.f32.mrf.mxu2 }
 0x2c4   : > { %v1473_v60 = vadd.f32 %v1875_v44, %v1472_v33 }
 0x2c6   : > { %1500 = vst [vmem:[%s2228_s24 + $0x50] sm:$0xff] %v1473_v60 }
 0x2cb   : > { %v1475_v22 = vpop.f32.mrf.mxu2 }
 0x2cc   : > { %v1476_v45 = vadd.f32 %v1875_v44, %v1475_v22 }
 0x2ce   : > { %1501 = vst [vmem:[%s2228_s24 + $0x58] sm:$0xff] %v1476_v45 }
 0x2d3   : > { %v1478_v42 = vpop.f32.mrf.mxu2 }
 0x2d4   : > { %v1479_v61 = vadd.f32 %v1875_v44, %v1478_v42 }
 0x2d6   : > { %1502 = vst [vmem:[%s2228_s24 + $0x60] sm:$0xff] %v1479_v61 }
 0x2db   : > { %v1481_v20 = vpop.f32.mrf.mxu2 }
 0x2dc   : > { %v1482_v9 = vadd.f32 %v1875_v44, %v1481_v20 }
 0x2de   : > { %1503 = vst [vmem:[%s2228_s24 + $0x68] sm:$0xff] %v1482_v9 }
 0x2e3   : > { %v1484_v39 = vpop.f32.mrf.mxu2 }
 0x2e4   : > { %v1485_v56 = vadd.f32 %v1875_v44, %v1484_v39 }
 0x2e6   : > { %1504 = vst [vmem:[%s2228_s24 + $0x70] sm:$0xff] %v1485_v56 }
 0x2eb   : > { %v1487_v53 = vpop.f32.mrf.mxu2 }
 0x2ec   : > { %v1488_v3 = vadd.f32 %v1875_v44, %v1487_v53 }
 0x2ee   : > { %1505 = vst [vmem:[%s2228_s24 + $0x78] sm:$0xff] %v1488_v3 }
 0x2ef PF: > { %s1729_s14 = sshll.u32 %s2048_s28, 7  ;;  %s3340_s16 = sld [smem:[#allocation24_spill]] }
 0x2f0   : > { %s1519_s15 = sshll.u32 %s2228_s24, 4  ;;  %s1507_s9 = scalar_lea.sflag [#allocation5], %s301_s6  ;;  %s1520_s15 = int_to_ptr.vmem [resolvable:$true] %s1519_s15 }
 0x2f5   : > { %s1518_s8 = scalar_lea.hbm %s3340_s16, %s1729_s14  ;;  %s1958_s28 = scalar_lea.hbm %s3340_s16, 256 }
 0x2f6   : > { %s1521_s12 = sshll.u32 %s1518_s8, 4  ;;  %s1522_s12 = int_to_ptr.hbm [resolvable:$true] %s1521_s12 }
 0x2f7   : > { %s1952_s11 = sshra.s32 %s1522_s12, 4  ;;  %s1953_s11 = int_to_ptr.hbm [resolvable:$true] %s1952_s11 }
 0x2f8   : > { %s1954_s13 = scalar_lea.hbm %s1953_s11, 128  ;;  %p1959_p0 = scmp.lt.s32.totalorder %s1953_s11, %s3340_s16 }
 0x2f9   : > { %p1955_p10 = scmp.ne.s32.totalorder %s1953_s11, %s1954_s13  ;;  %p1960_p1 = scmp.lt.s32.totalorder %s1958_s28, %s1954_s13 }
 0x2fb   : > { %p1956_p11 = pnand %p1955_p10, %p2185_p12  ;;  %p1961_p4 = por %p1960_p1, %p1959_p0 }
 0x2fd   : > { %p1957_p13 = pneg %p1956_p11 }
 0x2ff   : > { %p1962_p5 = pnand %p1961_p4, %p1957_p13 }
 0x301   : > { %1965 = shalt.err (!%p1962_p5)
}
 0x302   : > { %s2066_s6 = smov 128   ;;  %s2067_s24 = smov 8  }
 0x303   : > { %1768 = dma.vmem_to_hbm [thread:$0]  (%p2185_p12), %s1520_s15, 2048, %s1522_s12, %s1507_s9, %s2066_s6, %s2066_s6, %s2067_s24  }
 0x304 PF: > { %p1779_p6 = scmp.ge.s32.totalorder %s2060_s7, 2  ;;  %s1536_s14 = sand.u32 1, %s2020_s21  }
 0x305   : > { %s1537_s19 = scalar_lea.sflag [#allocation5], %s1536_s14 }
 0x306   : > { %p1775_p8 = pnand %p1779_p6, %p2198_p2 }
 0x308   : > { %p1776_p3 = pneg %p1775_p8 }
 0x30a   : > { %2015 = dma.done.wait (%p1776_p3), %s1537_s19, 2048  }
 0x30b   : > { %2017 = vsyncadd (%p1776_p3), %s1537_s19, 4294965248  ;;  %s22_s7 = sadd.s32 1, %s2060_s7   ;;  %s3342_s20 = sld [smem:[#allocation9_spill]] }
 0x30c   : > { %p19_p9 = scmp.ge.s32.totalorder %s22_s7, 6   ;;  %s3343_s23 = sld [smem:[#allocation14_spill]] }
 0x30d   : > { %s3344_s10 = sld [smem:[#allocation10_spill]]  ;;  %s3348_s21 = smov %s2024_s22 }
 0x30e   : > { %s3345_s26 = sld [smem:[#allocation15_spill]]  ;;  %s3350_s24 = smov %s2036_s25 }
 0x30f   : > { %s3346_s8 = sld [smem:[#allocation11_spill]]  ;;  %s3352_s27 = smov %s2052_s29 }
 0x310   : > { %s3347_s15 = sld [smem:[#allocation12_spill]]  ;;  %s3353_s28 = smov %s2056_s30 }
 0x311   : > { %s3349_s22 = smov %s3342_s20 }
 0x312   :  { %21 = sbr.rel (!%p19_p9) target bundleno = 11 (0xb), region = 100 }
 0x313   : > { %s3351_s25 = smov %s3344_s10 }
 0x315   : > { %s3354_s29 = smov %s3346_s8 }
 0x316   : > { %s3355_s30 = smov %s3347_s15 }
 0x317   :  { %1543 = vsyncpa [#allocation4], 1 }
 0x318   :  { %1545 = vsyncpa [#allocation4 + $0x1], 1 }
 0x319   :  { %1546 = vsyncpa [#allocation5], 1 }
 0x31a   :  { %1548 = vsyncpa [#allocation5 + $0x1], 1 }

</bundles_post_ra>
